<compile_context>
chip_gen: v6e
topology: v6e:2x2x1
jax: 0.10.0
libtpu: 0.0.40
codegen_flags: <defaults>
</compile_context>

<pallas_src>
import jax
import jax.numpy as jnp
from jax import lax
from jax.experimental import pallas as pl
from jax.experimental.pallas import tpu as pltpu


def _self_attention_kernel(x_ref, o_ref, lhs_ref):
    # x_ref / o_ref block: (Bt*C, N)   (Bt batch images, channel-major rows)
    # lhs_ref scratch:     (C+1, N)    rows 0..C-1 = x, row C = ones
    cp1, n = lhs_ref.shape
    c = cp1 - 1
    bt = x_ref.shape[0] // c

    # Ones row for the fused (x @ e, colsum) matmul — written once per step.
    lhs_ref[c:c + 1, :] = jnp.ones((1, n), dtype=jnp.float32)

    # Bt is small and static; unrolled Python loop keeps every slice static.
    for i in range(bt):
        x = x_ref[i * c:(i + 1) * c, :].astype(jnp.float32)      # (C, N)

        # scores[j, k] = sum_c x[c, j] * x[c, k]  ==  x^T @ x  -> (N, N)
        scores = lax.dot_general(
            x, x,
            dimension_numbers=(((0,), (0,)), ((), ())),
            preferred_element_type=jnp.float32,
        )

        # softmax over axis 0 (PyTorch dim=1), kept unnormalized:
        m = jnp.max(scores, axis=0, keepdims=True)               # (1, N)
        e = jnp.exp(scores - m)                                  # (N, N)

        # One MXU pass: rows 0..C-1 give x @ e, row C gives the column sums.
        lhs_ref[:c, :] = x
        fused = jnp.dot(lhs_ref[...], e,
                        preferred_element_type=jnp.float32)      # (C+1, N)
        ai_un = fused[:c, :]                                      # x @ e
        denom = fused[c:c + 1, :]                                 # colsum(e)

        scale = jnp.float32(0.002) * pl.reciprocal(denom, approx=True)  # (1, N)
        o_ref[i * c:(i + 1) * c, :] = (x + ai_un * scale).astype(o_ref.dtype)


def _pick_bt(B, C, N, vmem_budget_bytes=16 * 1024 * 1024):
    """Largest divisor of B giving 8-aligned (Bt*C) rows within a VMEM budget."""
    def vmem_bytes(bt):
        block = bt * C * N * 4
        # 2x double-buffered input + output blocks, (N,N) scores + exp temps,
        # and the (C+1, N) fused-matmul scratch.
        return 4 * block + 2 * N * N * 4 + (C + 1) * N * 4

    best = None
    for cand in range(1, B + 1):
        if B % cand:
            continue
        aligned = (cand * C) % 8 == 0 or cand == B  # full-extent block also legal
        if aligned and vmem_bytes(cand) <= vmem_budget_bytes:
            best = cand
    if best is not None:
        return best
    # Fall back: smallest aligned divisor (block may exceed the soft budget).
    for cand in range(1, B + 1):
        if B % cand == 0 and ((cand * C) % 8 == 0 or cand == B):
            return cand
    return B


def self_attention(x, bt=None):
    """x: (B, C, W, H) float32 -> same shape."""
    B, C, W, H = x.shape
    N = W * H
    if bt is None:
        bt = _pick_bt(B, C, N)
    assert B % bt == 0

    x_flat = x.reshape(B * C, N)
    rows = bt * C

    cost = pl.CostEstimate(
        flops=int(4 * B * C * N * N),
        transcendentals=int(B * N * N),
        bytes_accessed=int(2 * B * C * N * 4),
    )

    out_flat = pl.pallas_call(
        _self_attention_kernel,
        out_shape=jax.ShapeDtypeStruct((B * C, N), x.dtype),
        grid_spec=pltpu.PrefetchScalarGridSpec(
            num_scalar_prefetch=0,
            grid=(B // bt,),
            in_specs=[pl.BlockSpec((rows, N), lambda b: (b, 0))],
            out_specs=pl.BlockSpec((rows, N), lambda b: (b, 0)),
            scratch_shapes=[pltpu.VMEM((C + 1, N), jnp.float32)],
        ),
        compiler_params=pltpu.CompilerParams(
            dimension_semantics=("parallel",),
        ),
        cost_estimate=cost,
    )(x_flat)

    return out_flat.reshape(B, C, W, H)


def self_attention_ref(x):
    B, C, W, H = x.shape
    N = W * H
    lui = x.reshape(B, C, N)
    hvi = jnp.transpose(lui, (0, 2, 1))
    uivi = jnp.einsum("bnc,bcm->bnm", hvi, lui)
    attn = jax.nn.softmax(uivi, axis=1)
    ai = jnp.einsum("bcn,bnm->bcm", lui, attn)
    return x + 0.002 * ai.reshape(x.shape)


if __name__ == "__main__":
    key = jax.random.PRNGKey(0)
    # Small shapes consistent with the module: B=2, C=4, spatial 16x16 (N=256)
    x = jax.random.normal(key, (2, 4, 16, 16), dtype=jnp.float32)

    out = self_attention(x)
    out = jax.block_until_ready(out)

    ref = self_attention_ref(x)
    assert out.shape == x.shape and out.dtype == x.dtype
    assert jnp.allclose(out, ref, atol=1e-4, rtol=1e-4), "mismatch vs reference"

    print("KERNEL_OK")
</pallas_src>

<mosaic_0001>
module attributes {stable_mosaic.version = 11 : i64} {
  func.func @_self_attention_kernel(%arg0: i32, %arg1: memref<8x256xf32, #tpu.memory_space<vmem>>, %arg2: memref<8x256xf32, #tpu.memory_space<vmem>>, %arg3: memref<5x256xf32, #tpu.memory_space<vmem>>) attributes {dimension_semantics = [#tpu.dimension_semantics<parallel>], iteration_bounds = array<i64: 1>, scalar_prefetch = 0 : i64, scratch_operands = 1 : i64, tpu.core_type = #tpu.core_type<tc>, window_params = [{transform_indices = @transform_0, window_bounds = array<i64: 8, 256>}, {transform_indices = @transform_1, window_bounds = array<i64: 8, 256>}]} {
    %cst = arith.constant 1.000000e+00 : f32
    %0 = vector.broadcast %cst : f32 to vector<1x256xf32>
    %c4 = arith.constant 4 : index
    %c0 = arith.constant 0 : index
    %1 = vector.load %arg3[%c4, %c0] : memref<5x256xf32, #tpu.memory_space<vmem>>, vector<1x256xf32>
    tpu.vector_store %arg3[%c4, %c0], %0 {strides = array<i32>} : memref<5x256xf32, #tpu.memory_space<vmem>>, vector<1x256xf32>,
    %c0_0 = arith.constant 0 : index
    %c0_1 = arith.constant 0 : index
    %2 = vector.load %arg1[%c0_0, %c0_1] : memref<8x256xf32, #tpu.memory_space<vmem>>, vector<4x256xf32>
    %cst_2 = arith.constant dense<0.000000e+00> : vector<256x256xf32>
    %3 = tpu.matmul %2, %2, %cst_2 {dimension_numbers = #tpu.dot_dimension_numbers<[0], [0], [1], [1], [0, 1, 1, 1], [], []>} : vector<4x256xf32>, vector<4x256xf32>, vector<256x256xf32> -> vector<256x256xf32>
    %cst_3 = arith.constant dense<0xFF800000> : vector<256xf32>
    %4 = vector.multi_reduction <maximumf>, %3, %cst_3 [0] : vector<256x256xf32> to vector<256xf32>
    %5 = vector.shape_cast %4 : vector<256xf32> to vector<1x256xf32>
    %6 = vector.broadcast %5 : vector<1x256xf32> to vector<256x256xf32>
    %7 = arith.subf %3, %6 : vector<256x256xf32>
    %8 = math.exp %7 : vector<256x256xf32>
    %c0_4 = arith.constant 0 : index
    %c0_5 = arith.constant 0 : index
    %9 = vector.load %arg3[%c0_4, %c0_5] : memref<5x256xf32, #tpu.memory_space<vmem>>, vector<4x256xf32>
    tpu.vector_store %arg3[%c0_4, %c0_5], %2 {strides = array<i32>} : memref<5x256xf32, #tpu.memory_space<vmem>>, vector<4x256xf32>,
    %c0_6 = arith.constant 0 : index
    %c0_7 = arith.constant 0 : index
    %10 = vector.load %arg3[%c0_6, %c0_7] : memref<5x256xf32, #tpu.memory_space<vmem>>, vector<5x256xf32>
    %cst_8 = arith.constant dense<0.000000e+00> : vector<5x256xf32>
    %11 = tpu.matmul %10, %8, %cst_8 {dimension_numbers = #tpu.dot_dimension_numbers<[1], [0], [0], [1], [0, 0, 1, 1], [], []>} : vector<5x256xf32>, vector<256x256xf32>, vector<5x256xf32> -> vector<5x256xf32>
    %12 = vector.extract_strided_slice %11 {offsets = [0, 0], sizes = [4, 256], strides = [1, 1]} : vector<5x256xf32> to vector<4x256xf32>
    %13 = vector.extract_strided_slice %11 {offsets = [4, 0], sizes = [1, 256], strides = [1, 1]} : vector<5x256xf32> to vector<1x256xf32>
    %14 = tpu.reciprocal %13 {approx = true} : vector<1x256xf32> -> vector<1x256xf32>
    %cst_9 = arith.constant 2.000000e-03 : f32
    %15 = vector.broadcast %cst_9 : f32 to vector<1x256xf32>
    %16 = arith.mulf %15, %14 : vector<1x256xf32>
    %17 = vector.broadcast %16 : vector<1x256xf32> to vector<4x256xf32>
    %18 = arith.mulf %12, %17 : vector<4x256xf32>
    %19 = arith.addf %2, %18 : vector<4x256xf32>
    %c0_10 = arith.constant 0 : index
    %c0_11 = arith.constant 0 : index
    %20 = vector.load %arg2[%c0_10, %c0_11] : memref<8x256xf32, #tpu.memory_space<vmem>>, vector<4x256xf32>
    tpu.vector_store %arg2[%c0_10, %c0_11], %19 {strides = array<i32>} : memref<8x256xf32, #tpu.memory_space<vmem>>, vector<4x256xf32>,
    %c4_12 = arith.constant 4 : index
    %c0_13 = arith.constant 0 : index
    %21 = vector.load %arg1[%c4_12, %c0_13] : memref<8x256xf32, #tpu.memory_space<vmem>>, vector<4x256xf32>
    %cst_14 = arith.constant dense<0.000000e+00> : vector<256x256xf32>
    %22 = tpu.matmul %21, %21, %cst_14 {dimension_numbers = #tpu.dot_dimension_numbers<[0], [0], [1], [1], [0, 1, 1, 1], [], []>} : vector<4x256xf32>, vector<4x256xf32>, vector<256x256xf32> -> vector<256x256xf32>
    %cst_15 = arith.constant dense<0xFF800000> : vector<256xf32>
    %23 = vector.multi_reduction <maximumf>, %22, %cst_15 [0] : vector<256x256xf32> to vector<256xf32>
    %24 = vector.shape_cast %23 : vector<256xf32> to vector<1x256xf32>
    %25 = vector.broadcast %24 : vector<1x256xf32> to vector<256x256xf32>
    %26 = arith.subf %22, %25 : vector<256x256xf32>
    %27 = math.exp %26 : vector<256x256xf32>
    %c0_16 = arith.constant 0 : index
    %c0_17 = arith.constant 0 : index
    %28 = vector.load %arg3[%c0_16, %c0_17] : memref<5x256xf32, #tpu.memory_space<vmem>>, vector<4x256xf32>
    tpu.vector_store %arg3[%c0_16, %c0_17], %21 {strides = array<i32>} : memref<5x256xf32, #tpu.memory_space<vmem>>, vector<4x256xf32>,
    %c0_18 = arith.constant 0 : index
    %c0_19 = arith.constant 0 : index
    %29 = vector.load %arg3[%c0_18, %c0_19] : memref<5x256xf32, #tpu.memory_space<vmem>>, vector<5x256xf32>
    %cst_20 = arith.constant dense<0.000000e+00> : vector<5x256xf32>
    %30 = tpu.matmul %29, %27, %cst_20 {dimension_numbers = #tpu.dot_dimension_numbers<[1], [0], [0], [1], [0, 0, 1, 1], [], []>} : vector<5x256xf32>, vector<256x256xf32>, vector<5x256xf32> -> vector<5x256xf32>
    %31 = vector.extract_strided_slice %30 {offsets = [0, 0], sizes = [4, 256], strides = [1, 1]} : vector<5x256xf32> to vector<4x256xf32>
    %32 = vector.extract_strided_slice %30 {offsets = [4, 0], sizes = [1, 256], strides = [1, 1]} : vector<5x256xf32> to vector<1x256xf32>
    %33 = tpu.reciprocal %32 {approx = true} : vector<1x256xf32> -> vector<1x256xf32>
    %cst_21 = arith.constant 2.000000e-03 : f32
    %34 = vector.broadcast %cst_21 : f32 to vector<1x256xf32>
    %35 = arith.mulf %34, %33 : vector<1x256xf32>
    %36 = vector.broadcast %35 : vector<1x256xf32> to vector<4x256xf32>
    %37 = arith.mulf %31, %36 : vector<4x256xf32>
    %38 = arith.addf %21, %37 : vector<4x256xf32>
    %c4_22 = arith.constant 4 : index
    %c0_23 = arith.constant 0 : index
    %39 = vector.load %arg2[%c4_22, %c0_23] : memref<8x256xf32, #tpu.memory_space<vmem>>, vector<4x256xf32>
    tpu.vector_store %arg2[%c4_22, %c0_23], %38 {strides = array<i32>} : memref<8x256xf32, #tpu.memory_space<vmem>>, vector<4x256xf32>,
    return
  }
  func.func @transform_0(%arg0: i32) -> (i32, i32) {
    %c0_i32 = arith.constant 0 : i32
    %c0_i32_0 = arith.constant 0 : i32
    return %arg0, %c0_i32 : i32, i32
  }
  func.func @transform_1(%arg0: i32) -> (i32, i32) {
    %c0_i32 = arith.constant 0 : i32
    %c0_i32_0 = arith.constant 0 : i32
    return %arg0, %c0_i32 : i32, i32
  }
}

</mosaic_0001>

<bundles_post_ra>
// kernel: tpu_custom_call.1
= control target key start
LH: loop header
LB: loop body
LE: loop exit
PB: predicated region body
PF: predicated region fallthrough
CT: control target
= control target key end

     0   :  { %6 = vsyncpa [#allocation4], 0  ;;  %s2862_s0 = inlined_call_operand.hbm [shape: f32[8,256], index: 0, kind: input, shape index: {}]   ;;  %s2863_s1 = inlined_call_operand.hbm [shape: f32[8,256], index: 1, kind: output, shape index: {}]  }
   0x1   :  { %7 = vsyncpa [#allocation5], 0  ;;  %s2005_s6 = smov [#allocation3]  }
   0x2   :  { %s14_s7 = sshll.u32 %s2005_s6, 4  ;;  %s15_s7 = int_to_ptr.vmem [resolvable:$true] %s14_s7 }
   0x3   :  { %s1969_s8 = scalar_lea.vmem %s15_s7, 256  ;;  %p1974_p1 = scmp.lt.s32.totalorder %s15_s7, %s15_s7 }
   0x4   :  { %p1970_p0 = scmp.ne.s32.totalorder %s15_s7, %s1969_s8  ;;  %p1975_p2 = scmp.lt.s32.totalorder %s1969_s8, %s1969_s8 }
   0x6   :  { %p1976_p3 = por %p1975_p2, %p1974_p1 }
   0x8   :  { %p1977_p4 = pnand %p1976_p3, %p1970_p0 }
   0xa   :  { %1980 = shalt.err (!%p1977_p4)
}
   0xb   :  { %17 = dma.hbm_to_vmem [thread:$0]  %s2862_s0, 256, %s15_s7, [#allocation4]  }
   0xc   :  { %2001 = dma.done.wait [#allocation4], 256  }
   0xd   :  { %2002 = vsyncadd [#allocation4], 4294967040  ;;  %v2864_v0 = vmov 0.0   ;;  %vm191_vm0 = vcmask 1043456   ;;  %v2023_v1 = vld [vmem:[#allocation3] sm:$0xf] }
   0xe   :  { %262 = vmatprep.mubr.f32.mxu0 %v2864_v0  ;;  %2920 = vst [vmem:[#allocation9_spill] sm:$0xff] %v2023_v1  ;;  %v2025_v2 = vld [vmem:[#allocation3 + $0x8] sm:$0xf]  ;;  %30 = vxpose.xlu0.b32.start.end [1/1] (short) %v2023_v1, 128  ;;  %721 = vst [vmem:[#allocation2] sm:$0xf] %v2023_v1  ;;  %vm94_vm1 = vcmask 31744  }
   0xf   :  { %2921 = vst [vmem:[#allocation10_spill] sm:$0xff] %v2025_v2  ;;  %722 = vst [vmem:[#allocation2 + $0x8] sm:$0xf] %v2025_v2  ;;  %1623 = vmatprep.subr.msk.mxu0 %vm191_vm0, %v2025_v2  ;;  %v814_v35 = vld [vmem:[#allocation3] sm:$0xf0]  ;;  %s2008_s0 = smov [#allocation6]  }
  0x10   :  { %1624 = vmatpush1.msk.msra.mxu0 %vm191_vm0, %v2023_v1  ;;  %v2098_v36 = vrot.slane %v814_v35, 4  ;;  %s1614_s11 = sshll.u32 %s2008_s0, 4  ;;  %s1615_s11 = int_to_ptr.vmem [resolvable:$true] %s1614_s11 }
  0x11   :  { %s1981_s12 = scalar_lea.vmem %s1615_s11, 256  ;;  %p1986_p6 = scmp.lt.s32.totalorder %s1615_s11, %s1615_s11 }
  0x12   :  { %2922 = vst [vmem:[#allocation11_spill] sm:$0xff] %v2098_v36  ;;  %822 = vxpose.xlu1.b32.start.end [1/1] (short) %v2098_v36, 128  ;;  %p1982_p5 = scmp.ne.s32.totalorder %s1615_s11, %s1981_s12  ;;  %p1987_p7 = scmp.lt.s32.totalorder %s1981_s12, %s1981_s12 }
  0x14   :  { %p1988_p8 = por %p1987_p7, %p1986_p6 }
  0x16   :  { %p1989_p9 = pnand %p1988_p8, %p1982_p5 }
  0x4b   :  { %62 = vxpose.xlu0.b32.start.end [1/1] (short) %v2025_v2, 128 }
  0x8a   :  { %v46_v3 = vpop.trf.xlu0 }
  0x8b   :  { %1625 = vmatmul.mubr.msk.f32.vlgmr.msra.gmra.mxu0 %vm94_vm1, %v46_v3 }
  0x8c   :  { %268 = vmatprep.mubr.f32.mxu0 %v2864_v0 }
  0x8e   :  { %v47_v4 = vpop.trf.xlu0 }
  0x8f   :  { %1626 = vmatmul.mubr.msk.f32.gmra.mxu0 %vm94_vm1, %v47_v4 }
  0x90   :  { %274 = vmatprep.mubr.f32.mxu0 %v2864_v0 }
  0x92   :  { %v48_v5 = vpop.trf.xlu0 }
  0x93   :  { %1627 = vmatmul.mubr.msk.f32.gmra.mxu0 %vm94_vm1, %v48_v5 }
  0x94   :  { %280 = vmatprep.mubr.f32.mxu0 %v2864_v0 }
  0x96   :  { %v49_v6 = vpop.trf.xlu0 }
  0x97   :  { %1628 = vmatmul.mubr.msk.f32.gmra.mxu0 %vm94_vm1, %v49_v6 }
  0x98   :  { %286 = vmatprep.mubr.f32.mxu0 %v2864_v0 }
  0x9a   :  { %v50_v7 = vpop.trf.xlu0 }
  0x9b   :  { %1629 = vmatmul.mubr.msk.f32.gmra.mxu0 %vm94_vm1, %v50_v7 }
  0x9c   :  { %292 = vmatprep.mubr.f32.mxu0 %v2864_v0 }
  0x9e   :  { %v51_v8 = vpop.trf.xlu0 }
  0x9f   :  { %1630 = vmatmul.mubr.msk.f32.gmra.mxu0 %vm94_vm1, %v51_v8 }
  0xa0   :  { %298 = vmatprep.mubr.f32.mxu0 %v2864_v0 }
  0xa2   :  { %v52_v9 = vpop.trf.xlu0 }
  0xa3   :  { %1631 = vmatmul.mubr.msk.f32.gmra.mxu0 %vm94_vm1, %v52_v9 }
  0xa4   :  { %304 = vmatprep.mubr.f32.mxu0 %v2864_v0 }
  0xa6   :  { %v53_v10 = vpop.trf.xlu0 }
  0xa7   :  { %1632 = vmatmul.mubr.msk.f32.gmra.mxu0 %vm94_vm1, %v53_v10 }
  0xa8   :  { %310 = vmatprep.mubr.f32.mxu0 %v2864_v0 }
  0xaa   :  { %v54_v11 = vpop.trf.xlu0 }
  0xab   :  { %1633 = vmatmul.mubr.msk.f32.gmra.mxu0 %vm94_vm1, %v54_v11 }
  0xac   :  { %316 = vmatprep.mubr.f32.mxu0 %v2864_v0 }
  0xae   :  { %v55_v12 = vpop.trf.xlu0 }
  0xaf   :  { %1634 = vmatmul.mubr.msk.f32.gmra.mxu0 %vm94_vm1, %v55_v12 }
  0xb0   :  { %322 = vmatprep.mubr.f32.mxu0 %v2864_v0 }
  0xb2   :  { %v56_v13 = vpop.trf.xlu0 }
  0xb3   :  { %1635 = vmatmul.mubr.msk.f32.gmra.mxu0 %vm94_vm1, %v56_v13 }
  0xb4   :  { %328 = vmatprep.mubr.f32.mxu0 %v2864_v0 }
  0xb6   :  { %v57_v14 = vpop.trf.xlu0 }
  0xb7   :  { %1636 = vmatmul.mubr.msk.f32.gmra.mxu0 %vm94_vm1, %v57_v14 }
  0xb8   :  { %334 = vmatprep.mubr.f32.mxu0 %v2864_v0 }
  0xba   :  { %v58_v15 = vpop.trf.xlu0 }
  0xbb   :  { %1637 = vmatmul.mubr.msk.f32.gmra.mxu0 %vm94_vm1, %v58_v15 }
  0xbc   :  { %340 = vmatprep.mubr.f32.mxu0 %v2864_v0 }
  0xbe   :  { %v59_v16 = vpop.trf.xlu0 }
  0xbf   :  { %1638 = vmatmul.mubr.msk.f32.gmra.mxu0 %vm94_vm1, %v59_v16 }
  0xc0   :  { %346 = vmatprep.mubr.f32.mxu0 %v2864_v0 }
  0xc2   :  { %v60_v17 = vpop.trf.xlu0 }
  0xc3   :  { %1639 = vmatmul.mubr.msk.f32.gmra.mxu0 %vm94_vm1, %v60_v17 }
  0xc4   :  { %352 = vmatprep.mubr.f32.mxu0 %v2864_v0 }
  0xc6   :  { %v61_v18 = vpop.trf.xlu0 }
  0xc7   :  { %1640 = vmatmul.mubr.msk.f32.gmra.mxu0 %vm94_vm1, %v61_v18 }
  0xc8   :  { %358 = vmatprep.mubr.f32.mxu0 %v2864_v0 }
  0xca   :  { %v78_v19 = vpop.trf.xlu0 }
  0xcb   :  { %1641 = vmatmul.mubr.msk.f32.gmra.mxu0 %vm94_vm1, %v78_v19 }
  0xcc   :  { %364 = vmatprep.mubr.f32.mxu0 %v2864_v0 }
  0xce   :  { %v79_v20 = vpop.trf.xlu0 }
  0xcf   :  { %1642 = vmatmul.mubr.msk.f32.gmra.mxu0 %vm94_vm1, %v79_v20 }
  0xd0   :  { %370 = vmatprep.mubr.f32.mxu0 %v2864_v0 }
  0xd2   :  { %v80_v21 = vpop.trf.xlu0 }
  0xd3   :  { %1643 = vmatmul.mubr.msk.f32.gmra.mxu0 %vm94_vm1, %v80_v21 }
  0xd4   :  { %376 = vmatprep.mubr.f32.mxu0 %v2864_v0 }
  0xd6   :  { %v81_v22 = vpop.trf.xlu0 }
  0xd7   :  { %1644 = vmatmul.mubr.msk.f32.gmra.mxu0 %vm94_vm1, %v81_v22 }
  0xd8   :  { %382 = vmatprep.mubr.f32.mxu0 %v2864_v0 }
  0xda   :  { %v82_v23 = vpop.trf.xlu0 }
  0xdb   :  { %1645 = vmatmul.mubr.msk.f32.gmra.mxu0 %vm94_vm1, %v82_v23  ;;  %v815_v23 = vld [vmem:[#allocation3 + $0x8] sm:$0xf0] }
  0xdc   :  { %388 = vmatprep.mubr.f32.mxu0 %v2864_v0 }
  0xde   :  { %v83_v24 = vpop.trf.xlu0 }
  0xdf   :  { %1646 = vmatmul.mubr.msk.f32.gmra.mxu0 %vm94_vm1, %v83_v24 }
  0xe0   :  { %394 = vmatprep.mubr.f32.mxu0 %v2864_v0 }
  0xe2   :  { %v84_v25 = vpop.trf.xlu0 }
  0xe3   :  { %1647 = vmatmul.mubr.msk.f32.gmra.mxu0 %vm94_vm1, %v84_v25  ;;  %v2197_v25 = vrot.slane %v815_v23, 4 }
  0xe4   :  { %400 = vmatprep.mubr.f32.mxu0 %v2864_v0 }
  0xe5   :  { %2944 = vst [vmem:[#allocation33_spill] sm:$0xff] %v2197_v25  ;;  %854 = vxpose.xlu1.b32.start.end [1/1] (short) %v2197_v25, 128 }
  0xe6   :  { %v85_v26 = vpop.trf.xlu0 }
  0xe7   :  { %1648 = vmatmul.mubr.msk.f32.gmra.mxu0 %vm94_vm1, %v85_v26 }
  0xe8   :  { %406 = vmatprep.mubr.f32.mxu0 %v2864_v0 }
  0xea   :  { %v86_v27 = vpop.trf.xlu0 }
  0xeb   :  { %1649 = vmatmul.mubr.msk.f32.gmra.mxu0 %vm94_vm1, %v86_v27 }
  0xec   :  { %412 = vmatprep.mubr.f32.mxu0 %v2864_v0 }
  0xee   :  { %v87_v28 = vpop.trf.xlu0 }
  0xef   :  { %1650 = vmatmul.mubr.msk.f32.gmra.mxu0 %vm94_vm1, %v87_v28 }
  0xf0   :  { %418 = vmatprep.mubr.f32.mxu0 %v2864_v0 }
  0xf2   :  { %v88_v29 = vpop.trf.xlu0 }
  0xf3   :  { %1651 = vmatmul.mubr.msk.f32.gmra.mxu0 %vm94_vm1, %v88_v29 }
  0xf4   :  { %424 = vmatprep.mubr.f32.mxu0 %v2864_v0 }
  0xf6   :  { %v89_v30 = vpop.trf.xlu0 }
  0xf7   :  { %1652 = vmatmul.mubr.msk.f32.gmra.mxu0 %vm94_vm1, %v89_v30 }
  0xf8   :  { %430 = vmatprep.mubr.f32.mxu0 %v2864_v0 }
  0xfa   :  { %v90_v31 = vpop.trf.xlu0 }
  0xfb   :  { %1653 = vmatmul.mubr.msk.f32.gmra.mxu0 %vm94_vm1, %v90_v31 }
  0xfc   :  { %436 = vmatprep.mubr.f32.mxu0 %v2864_v0 }
  0xfe   :  { %v91_v32 = vpop.trf.xlu0 }
  0xff   :  { %1654 = vmatmul.mubr.msk.f32.gmra.mxu0 %vm94_vm1, %v91_v32 }
 0x100   :  { %442 = vmatprep.mubr.f32.mxu0 %v2864_v0 }
 0x102   :  { %v92_v33 = vpop.trf.xlu0 }
 0x103   :  { %1655 = vmatmul.mubr.msk.f32.gmra.mxu0 %vm94_vm1, %v92_v33 }
 0x104   :  { %448 = vmatprep.mubr.f32.mxu0 %v2864_v0 }
 0x106   :  { %v93_v34 = vpop.trf.xlu0 }
 0x107   :  { %1656 = vmatmul.mubr.msk.f32.gmra.mxu0 %vm94_vm1, %v93_v34 }
 0x14b   :  { %v2101_v37 = vpop.f32.mrf.mxu0 }
 0x14c   :  { %2923 = vst [vmem:[#allocation12_spill] sm:$0xff] %v2101_v37 }
 0x14d   :  { %v2103_v38 = vpop.f32.mrf.mxu0 }
 0x14e   :  { %2924 = vst [vmem:[#allocation13_spill] sm:$0xff] %v2103_v38 }
 0x14f   :  { %v2105_v39 = vpop.f32.mrf.mxu0 }
 0x150   :  { %2925 = vst [vmem:[#allocation14_spill] sm:$0xff] %v2105_v39 }
 0x151   :  { %v2107_v40 = vpop.f32.mrf.mxu0 }
 0x152   :  { %2926 = vst [vmem:[#allocation15_spill] sm:$0xff] %v2107_v40 }
 0x153   :  { %v2109_v41 = vpop.f32.mrf.mxu0 }
 0x154   :  { %2927 = vst [vmem:[#allocation16_spill] sm:$0xff] %v2109_v41  ;;  %v455_v36 = vmax.f32 %v2101_v37, %v2109_v41 }
 0x155   :  { %v2111_v42 = vpop.f32.mrf.mxu0 }
 0x156   :  { %2928 = vst [vmem:[#allocation17_spill] sm:$0xff] %v2111_v42  ;;  %v492_v2 = vmax.f32 %v2103_v38, %v2111_v42 }
 0x157   :  { %v2113_v43 = vpop.f32.mrf.mxu0 }
 0x158   :  { %2929 = vst [vmem:[#allocation18_spill] sm:$0xff] %v2113_v43  ;;  %v456_v23 = vmax.f32 %v2105_v39, %v2113_v43 }
 0x159   :  { %v2115_v44 = vpop.f32.mrf.mxu0 }
 0x15a   :  { %2930 = vst [vmem:[#allocation19_spill] sm:$0xff] %v2115_v44  ;;  %v493_v35 = vmax.f32 %v2107_v40, %v2115_v44 }
 0x15b   :  { %v2117_v45 = vpop.f32.mrf.mxu0 }
 0x15c   :  { %2931 = vst [vmem:[#allocation20_spill] sm:$0xff] %v2117_v45  ;;  %v457_v40 = vmax.f32 %v455_v36, %v2117_v45 }
 0x15d   :  { %v2119_v46 = vpop.f32.mrf.mxu0 }
 0x15f   :  { %v2121_v47 = vpop.f32.mrf.mxu0 }
 0x160   :  { %v458_v25 = vmax.f32 %v456_v23, %v2121_v47 }
 0x161   :  { %v2123_v48 = vpop.f32.mrf.mxu0 }
 0x162   :  { %v495_v1 = vmax.f32 %v493_v35, %v2123_v48 }
 0x163   :  { %v2125_v49 = vpop.f32.mrf.mxu0 }
 0x164   :  { %v459_v35 = vmax.f32 %v457_v40, %v2125_v49 }
 0x165   :  { %v2127_v50 = vpop.f32.mrf.mxu0 }
 0x167   :  { %v2129_v51 = vpop.f32.mrf.mxu0 }
 0x168   :  { %v460_v39 = vmax.f32 %v458_v25, %v2129_v51 }
 0x169   :  { %v2131_v52 = vpop.f32.mrf.mxu0 }
 0x16b   :  { %v2133_v53 = vpop.f32.mrf.mxu0 }
 0x16d   :  { %v2135_v54 = vpop.f32.mrf.mxu0 }
 0x16f   :  { %v2137_v55 = vpop.f32.mrf.mxu0 }
 0x170   :  { %v462_v37 = vmax.f32 %v460_v39, %v2137_v55 }
 0x171   :  { %v2139_v56 = vpop.f32.mrf.mxu0 }
 0x173   :  { %v2141_v57 = vpop.f32.mrf.mxu0 }
 0x175   :  { %v2143_v58 = vpop.f32.mrf.mxu0 }
 0x177   :  { %v2145_v59 = vpop.f32.mrf.mxu0 }
 0x178   :  { %v464_v36 = vmax.f32 %v462_v37, %v2145_v59 }
 0x179   :  { %v2147_v60 = vpop.f32.mrf.mxu0 }
 0x17b   :  { %v2149_v61 = vpop.f32.mrf.mxu0 }
 0x17d   :  { %v2151_v62 = vpop.f32.mrf.mxu0 }
 0x17f   :  { %v2153_v63 = vpop.f32.mrf.mxu0 }
 0x180   :  { %v466_v40 = vmax.f32 %v464_v36, %v2153_v63 }
 0x181   :  { %v2155_v3 = vpop.f32.mrf.mxu0 }
 0x183   :  { %v2157_v4 = vpop.f32.mrf.mxu0 }
 0x185   :  { %v2159_v5 = vpop.f32.mrf.mxu0 }
 0x187   :  { %v2161_v6 = vpop.f32.mrf.mxu0 }
 0x189   :  { %v2163_v7 = vpop.f32.mrf.mxu0 }
 0x18b   :  { %v2165_v8 = vpop.f32.mrf.mxu0 }
 0x18c   :  { %2932 = vst [vmem:[#allocation21_spill] sm:$0xff] %v2165_v8 }
 0x18d   :  { %v2167_v9 = vpop.f32.mrf.mxu0 }
 0x18e   :  { %2933 = vst [vmem:[#allocation22_spill] sm:$0xff] %v2167_v9 }
 0x18f   :  { %v2169_v10 = vpop.f32.mrf.mxu0 }
 0x190   :  { %2934 = vst [vmem:[#allocation23_spill] sm:$0xff] %v2169_v10 }
 0x191   :  { %v2171_v11 = vpop.f32.mrf.mxu0 }
 0x192   :  { %2935 = vst [vmem:[#allocation24_spill] sm:$0xff] %v2171_v11 }
 0x193   :  { %v2173_v12 = vpop.f32.mrf.mxu0 }
 0x194   :  { %2936 = vst [vmem:[#allocation25_spill] sm:$0xff] %v2173_v12 }
 0x195   :  { %v2175_v13 = vpop.f32.mrf.mxu0 }
 0x196   :  { %2937 = vst [vmem:[#allocation26_spill] sm:$0xff] %v2175_v13 }
 0x197   :  { %v2177_v14 = vpop.f32.mrf.mxu0 }
 0x198   :  { %2938 = vst [vmem:[#allocation27_spill] sm:$0xff] %v2177_v14 }
 0x199   :  { %v2179_v15 = vpop.f32.mrf.mxu0 }
 0x19a   :  { %2939 = vst [vmem:[#allocation28_spill] sm:$0xff] %v2179_v15 }
 0x19b   :  { %v2181_v16 = vpop.f32.mrf.mxu0 }
 0x19c   :  { %2940 = vst [vmem:[#allocation29_spill] sm:$0xff] %v2181_v16 }
 0x19d   :  { %v2183_v17 = vpop.f32.mrf.mxu0 }
 0x19e   :  { %2941 = vst [vmem:[#allocation30_spill] sm:$0xff] %v2183_v17 }
 0x19f   :  { %v2185_v18 = vpop.f32.mrf.mxu0 }
 0x1a0   :  { %2942 = vst [vmem:[#allocation31_spill] sm:$0xff] %v2185_v18 }
 0x1a1   :  { %v2187_v19 = vpop.f32.mrf.mxu0 }
 0x1a2   :  { %2943 = vst [vmem:[#allocation32_spill] sm:$0xff] %v2187_v19 }
 0x1a3   :  { %v2189_v20 = vpop.f32.mrf.mxu0 }
 0x1a5   :  { %v2191_v21 = vpop.f32.mrf.mxu0 }
 0x1a7   :  { %v2193_v22 = vpop.f32.mrf.mxu0 }
 0x1a9   :  { %v2195_v24 = vpop.f32.mrf.mxu0 }
 0x1ab   :  { %v2199_v26 = vpop.f32.mrf.mxu0 }
 0x1ad   :  { %v2202_v27 = vpop.f32.mrf.mxu0 }
 0x1af   :  { %v2204_v28 = vpop.f32.mrf.mxu0 }
 0x1b1   :  { %v2206_v29 = vpop.f32.mrf.mxu0 }
 0x1b3   :  { %v2208_v30 = vpop.f32.mrf.mxu0 }
 0x1b4   :  { %2945 = vst [vmem:[#allocation34_spill] sm:$0xff] %v2208_v30  ;;  %v497_v30 = vmax.f32 %v495_v1, %v2131_v52  ;;  %v461_v1 = vmax.f32 %v459_v35, %v2133_v53  ;;  %v468_v35 = vmax.f32 %v466_v40, %v2161_v6 }
 0x1b5   :  { %v2210_v31 = vpop.f32.mrf.mxu0 }
 0x1b6   :  { %v499_v38 = vmax.f32 %v497_v30, %v2139_v56  ;;  %v463_v30 = vmax.f32 %v461_v1, %v2141_v57  ;;  %v470_v1 = vmax.f32 %v468_v35, %v2169_v10 }
 0x1b7   :  { %v2212_v32 = vpop.f32.mrf.mxu0 }
 0x1b9   :  { %v2214_v33 = vpop.f32.mrf.mxu0 }
 0x1bb   :  { %v2216_v34 = vpop.f32.mrf.mxu0  ;;  %v2947_v10 = vld [vmem:[#allocation34_spill] sm:$0xff] }
 0x1bc   :  { %2946 = vst [vmem:[#allocation35_spill] sm:$0xff] %v2216_v34  ;;  %v494_v34 = vmax.f32 %v492_v2, %v2119_v46  ;;  %v501_v2 = vmax.f32 %v499_v38, %v2147_v60  ;;  %v465_v38 = vmax.f32 %v463_v30, %v2149_v61  ;;  %v472_v30 = vmax.f32 %v470_v1, %v2177_v14 }
 0x1bd   :  { %v2222_v0 = vpop.f32.mrf.mxu0 }
 0x1be   :  { %v496_v44 = vmax.f32 %v494_v34, %v2127_v50  ;;  %v503_v34 = vmax.f32 %v501_v2, %v2155_v3  ;;  %v467_v2 = vmax.f32 %v465_v38, %v2157_v4  ;;  %v474_v38 = vmax.f32 %v472_v30, %v2185_v18 }
 0x1bf   :  { %v2234_v43 = vpop.f32.mrf.mxu0  ;;  %v21_v18 = vlaneseq }
 0x1c0   :  { %v498_v23 = vmax.f32 %v496_v44, %v2135_v54  ;;  %v505_v44 = vmax.f32 %v503_v34, %v2163_v7  ;;  %v469_v34 = vmax.f32 %v467_v2, %v2165_v8  ;;  %v476_v2 = vmax.f32 %v474_v38, %v2193_v22 }
 0x1c1   :  { %v2244_v41 = vpop.f32.mrf.mxu0  ;;  %vm23_vm2 = vcmp.lt.s32.totalorder %v21_v18, 256 }
 0x1c2   :  { %v500_v25 = vmax.f32 %v498_v23, %v2143_v58  ;;  %v507_v23 = vmax.f32 %v505_v44, %v2171_v11  ;;  %v471_v44 = vmax.f32 %v469_v34, %v2173_v12  ;;  %v478_v34 = vmax.f32 %v476_v2, %v2204_v28 }
 0x1c3   :  { %v2254_v42 = vpop.f32.mrf.mxu0  ;;  %v2948_v11 = vld [vmem:[#allocation35_spill] sm:$0xff] }
 0x1c4   :  { %v502_v39 = vmax.f32 %v500_v25, %v2151_v62  ;;  %v509_v25 = vmax.f32 %v507_v23, %v2179_v15  ;;  %v473_v23 = vmax.f32 %v471_v44, %v2181_v16  ;;  %v480_v44 = vmax.f32 %v478_v34, %v2212_v32 }
 0x1c5   :  { %v2264_v45 = vpop.f32.mrf.mxu0 }
 0x1c6   :  { %v504_v37 = vmax.f32 %v502_v39, %v2159_v5  ;;  %v511_v39 = vmax.f32 %v509_v25, %v2187_v19  ;;  %v475_v25 = vmax.f32 %v473_v23, %v2189_v20  ;;  %v482_v23 = vmax.f32 %v480_v44, %v2234_v43 }
 0x1c7   :  { %v2274_v8 = vpop.f32.mrf.mxu0 }
 0x1c8   :  { %v506_v36 = vmax.f32 %v504_v37, %v2167_v9  ;;  %v513_v37 = vmax.f32 %v511_v39, %v2195_v24  ;;  %v477_v39 = vmax.f32 %v475_v25, %v2199_v26  ;;  %v484_v25 = vmax.f32 %v482_v23, %v2274_v8 }
 0x1c9   :  { %v2284_v9 = vpop.f32.mrf.mxu0  ;;  %v2007_v23 = vmov 1.0  }
 0x1ca   :  { %v508_v40 = vmax.f32 %v506_v36, %v2175_v13  ;;  %v515_v36 = vmax.f32 %v513_v37, %v2206_v29  ;;  %v479_v37 = vmax.f32 %v477_v39, %v2947_v10  ;;  %26 = vst.msk [vmem:[#allocation2 + $0x4] ss:$8 sm:$0x3] %vm23_vm2, %v2007_v23 }
 0x1cc   :  { %v510_v35 = vmax.f32 %v508_v40, %v2183_v17  ;;  %v517_v40 = vmax.f32 %v515_v36, %v2214_v33  ;;  %v481_v36 = vmax.f32 %v479_v37, %v2948_v11 }
 0x1ce   :  { %v512_v1 = vmax.f32 %v510_v35, %v2191_v21  ;;  %v519_v35 = vmax.f32 %v517_v40, %v2244_v41  ;;  %v483_v12 = vmax.f32 %v481_v36, %v2254_v42  ;;  %v2949_v36 = vld [vmem:[#allocation33_spill] sm:$0xff] }
 0x1d0   :  { %v514_v30 = vmax.f32 %v512_v1, %v2202_v27  ;;  %v521_v1 = vmax.f32 %v519_v35, %v2284_v9 }
 0x1d2   :  { %v516_v38 = vmax.f32 %v514_v30, %v2210_v31  ;;  %v485_v30 = vmax.f32 %v483_v12, %v484_v25 }
 0x1d4   :  { %v518_v2 = vmax.f32 %v516_v38, %v2222_v0  ;;  %v486_v40 = vrot.slane %v485_v30, 4 }
 0x1d6   :  { %v520_v34 = vmax.f32 %v518_v2, %v2264_v45  ;;  %v487_v39 = vmax.f32 %v485_v30, %v486_v40 }
 0x1d8   :  { %v522_v13 = vmax.f32 %v520_v34, %v521_v1  ;;  %v488_v44 = vrot.slane %v487_v39, 2  ;;  %v2309_v1 = vld [vmem:[#allocation2] sm:$0x1f] }
 0x1da   :  { %v523_v14 = vrot.slane %v522_v13, 4  ;;  %v489_v38 = vmax.f32 %v487_v39, %v488_v44 }
 0x1dc   :  { %v524_v15 = vmax.f32 %v522_v13, %v523_v14  ;;  %v490_v19 = vrot.slane %v489_v38, 1 }
 0x1de   :  { %v525_v16 = vrot.slane %v524_v15, 2  ;;  %v2299_v2 = vmax.f32 %v489_v38, %v490_v19 }
 0x1e0   :  { %v526_v17 = vmax.f32 %v524_v15, %v525_v16  ;;  %v559_v13 = vsub.f32 %v2161_v6, %v2299_v2  ;;  %v557_v15 = vsub.f32 %v2157_v4, %v2299_v2  ;;  %v724_v16 = vld [vmem:[#allocation2 + $0x8] sm:$0x1f]  ;;  %v555_v6 = vsub.f32 %v2153_v63, %v2299_v2 }
 0x1e1   :  { %789 = vmatprep.mubr.f32.mxu1 %v724_v16  ;;  %1510 = vst [vmem:[#allocation2 + $0x8] sm:$0xf] %v2949_v36  ;;  %v553_v34 = vsub.f32 %v2149_v61, %v2299_v2  ;;  %v551_v39 = vsub.f32 %v2145_v59, %v2299_v2  ;;  %v547_v59 = vsub.f32 %v2137_v55, %v2299_v2 }
 0x1e2   :  { %v527_v35 = vrot.slane %v526_v17, 1  ;;  %v653_v25 = vmul.f32 1.442695, %v559_v13  ;;  %v649_v30 = vmul.f32 1.442695, %v557_v15  ;;  %v543_v55 = vsub.f32 %v2129_v51, %v2299_v2 }
 0x1e3   :  { %v645_v44 = vmul.f32 1.442695, %v555_v6  ;;  %v641_v61 = vmul.f32 1.442695, %v553_v34  ;;  %v637_v23 = vmul.f32 1.442695, %v551_v39  ;;  %v539_v51 = vsub.f32 %v2121_v47, %v2299_v2 }
 0x1e4   :  { %v2297_v37 = vmax.f32 %v526_v17, %v527_v35  ;;  %v629_v15 = vmul.f32 1.442695, %v547_v59  ;;  %v2951_v34 = vld [vmem:[#allocation20_spill] sm:$0xff] }
 0x1e6   :  { %v560_v12 = vsub.f32 %v2163_v7, %v2297_v37  ;;  %v558_v14 = vsub.f32 %v2159_v5, %v2297_v37  ;;  %v556_v17 = vsub.f32 %v2155_v3, %v2297_v37  ;;  %v2950_v7 = vld [vmem:[#allocation11_spill] sm:$0xff]  ;;  %v554_v5 = vsub.f32 %v2151_v62, %v2297_v37 }
 0x1e7   :  { %1509 = vst [vmem:[#allocation2] sm:$0xf] %v2950_v7  ;;  %v552_v3 = vsub.f32 %v2147_v60, %v2297_v37  ;;  %v550_v63 = vsub.f32 %v2143_v58, %v2297_v37  ;;  %v549_v62 = vsub.f32 %v2141_v57, %v2299_v2  ;;  %v548_v60 = vsub.f32 %v2139_v56, %v2297_v37 }
 0x1e8   :  { %v655_v19 = vmul.f32 1.442695, %v560_v12  ;;  %v651_v4 = vmul.f32 1.442695, %v558_v14  ;;  %v647_v40 = vmul.f32 1.442695, %v556_v17  ;;  %v546_v58 = vsub.f32 %v2135_v54, %v2297_v37 }
 0x1e9   :  { %v643_v38 = vmul.f32 1.442695, %v554_v5  ;;  %v639_v35 = vmul.f32 1.442695, %v552_v3  ;;  %v635_v12 = vmul.f32 1.442695, %v550_v63  ;;  %v545_v57 = vsub.f32 %v2133_v53, %v2299_v2 }
 0x1ea   :  { %1695 = vpow2.f32 %v655_v19  ;;  %v633_v13 = vmul.f32 1.442695, %v549_v62  ;;  %v544_v56 = vsub.f32 %v2131_v52, %v2297_v37  ;;  %v631_v14 = vmul.f32 1.442695, %v548_v60  ;;  %v2357_v62 = vpop.trf.xlu1  ;;  %v2954_v60 = vld [vmem:[#allocation17_spill] sm:$0xff] }
 0x1eb   :  { %1697 = vpow2.f32 %v653_v25  ;;  %v542_v54 = vsub.f32 %v2127_v50, %v2297_v37  ;;  %v627_v16 = vmul.f32 1.442695, %v546_v58  ;;  %v541_v53 = vsub.f32 %v2125_v49, %v2299_v2  ;;  %v2955_v58 = vld [vmem:[#allocation16_spill] sm:$0xff] }
 0x1ec   :  { %1699 = vpow2.f32 %v651_v4  ;;  %v625_v17 = vmul.f32 1.442695, %v545_v57  ;;  %v540_v52 = vsub.f32 %v2123_v48, %v2297_v37  ;;  %v623_v19 = vmul.f32 1.442695, %v544_v56  ;;  %v2956_v56 = vld [vmem:[#allocation15_spill] sm:$0xff] }
 0x1ed   :  { %1701 = vpow2.f32 %v649_v30  ;;  %v621_v25 = vmul.f32 1.442695, %v543_v55  ;;  %v538_v50 = vsub.f32 %v2119_v46, %v2297_v37  ;;  %v619_v4 = vmul.f32 1.442695, %v542_v54  ;;  %v2953_v46 = vld [vmem:[#allocation18_spill] sm:$0xff] }
 0x1ee   :  { %1703 = vpow2.f32 %v647_v40  ;;  %v537_v30 = vsub.f32 %v2951_v34, %v2299_v2  ;;  %v617_v48 = vmul.f32 1.442695, %v541_v53  ;;  %v2952_v40 = vld [vmem:[#allocation19_spill] sm:$0xff]  ;;  %v615_v39 = vmul.f32 1.442695, %v540_v52  ;;  %v2957_v54 = vld [vmem:[#allocation14_spill] sm:$0xff] }
 0x1ef   :  { %1705 = vpow2.f32 %v645_v44  ;;  %v536_v47 = vsub.f32 %v2952_v40, %v2297_v37  ;;  %v535_v63 = vsub.f32 %v2953_v46, %v2299_v2  ;;  %v611_v59 = vmul.f32 1.442695, %v538_v50  ;;  %v2958_v52 = vld [vmem:[#allocation13_spill] sm:$0xff] }
 0x1f0   :  { %1707 = vpow2.f32 %v643_v38  ;;  %v613_v38 = vmul.f32 1.442695, %v539_v51  ;;  %v609_v57 = vmul.f32 1.442695, %v537_v30  ;;  %v592_v34 = vsub.f32 %v2284_v9, %v2297_v37 }
 0x1f1   :  { %1709 = vpow2.f32 %v641_v61  ;;  %v607_v55 = vmul.f32 1.442695, %v536_v47  ;;  %v605_v53 = vmul.f32 1.442695, %v535_v63  ;;  %v589_v9 = vsub.f32 %v2254_v42, %v2299_v2 }
 0x1f2   :  { %1711 = vpow2.f32 %v639_v35  ;;  %v534_v35 = vsub.f32 %v2954_v60, %v2297_v37 }
 0x1f3   :  { %1713 = vpow2.f32 %v637_v23 }
 0x1f4   :  { %1715 = vpow2.f32 %v635_v12  ;;  %v533_v12 = vsub.f32 %v2955_v58, %v2299_v2 }
 0x1f5   :  { %1717 = vpow2.f32 %v633_v13 }
 0x1f6   :  { %1719 = vpow2.f32 %v631_v14  ;;  %v532_v14 = vsub.f32 %v2956_v56, %v2297_v37  ;;  %v601_v50 = vmul.f32 1.442695, %v533_v12 }
 0x1f7   :  { %v1696_v6 = vpop.eup %1695  ;;  %1721 = vpow2.f32 %v629_v15 }
 0x1f8   :  { %v1698_v5 = vpop.eup %1697  ;;  %1723 = vpow2.f32 %v627_v16  ;;  %725 = vmatprep.subr.mxu1 %v1696_v6  ;;  %v531_v16 = vsub.f32 %v2957_v54, %v2299_v2  ;;  %v603_v6 = vmul.f32 1.442695, %v534_v35  ;;  %v599_v30 = vmul.f32 1.442695, %v532_v14 }
 0x1f9   :  { %v1700_v49 = vpop.eup %1699  ;;  %1725 = vpow2.f32 %v625_v17  ;;  %726 = vmatpush1.msra.mxu1 %v1698_v5 }
 0x1fa   :  { %v1702_v3 = vpop.eup %1701  ;;  %1727 = vpow2.f32 %v623_v19  ;;  %727 = vmatprep.subr.mxu1 %v1700_v49  ;;  %v530_v19 = vsub.f32 %v2958_v52, %v2297_v37  ;;  %v597_v40 = vmul.f32 1.442695, %v531_v16 }
 0x1fb   :  { %v1704_v44 = vpop.eup %1703  ;;  %1729 = vpow2.f32 %v621_v25  ;;  %728 = vmatpush1.msra.mxu1 %v1702_v3  ;;  %v2959_v25 = vld [vmem:[#allocation12_spill] sm:$0xff]  ;;  %v591_v3 = vsub.f32 %v2274_v8, %v2299_v2  ;;  %v588_v8 = vsub.f32 %v2244_v41, %v2297_v37  ;;  %v585_v41 = vsub.f32 %v2948_v11, %v2299_v2 }
 0x1fc   :  { %v1706_v61 = vpop.eup %1705  ;;  %1731 = vpow2.f32 %v619_v4  ;;  %729 = vmatprep.subr.mxu1 %v1704_v44  ;;  %v529_v5 = vsub.f32 %v2959_v25, %v2299_v2  ;;  %v2371_v4 = vpop.trf.xlu1  ;;  %v595_v44 = vmul.f32 1.442695, %v530_v19  ;;  %v582_v11 = vsub.f32 %v2210_v31, %v2297_v37 }
 0x1fd   :  { %v1708_v23 = vpop.eup %1707  ;;  %1733 = vpow2.f32 %v617_v48  ;;  %730 = vmatpush1.msra.mxu1 %v1706_v61  ;;  %v719_v61 = vmul.f32 1.442695, %v592_v34  ;;  %v717_v35 = vmul.f32 1.442695, %v591_v3  ;;  %v711_v56 = vmul.f32 1.442695, %v588_v8 }
 0x1fe   :  { %v1710_v13 = vpop.eup %1709  ;;  %1735 = vpow2.f32 %v615_v39  ;;  %731 = vmatprep.subr.mxu1 %v1708_v23  ;;  %v590_v39 = vsub.f32 %v2264_v45, %v2297_v37  ;;  %v593_v63 = vmul.f32 1.442695, %v529_v5  ;;  %v587_v45 = vsub.f32 %v2234_v43, %v2299_v2 }
 0x1ff   :  { %v1712_v15 = vpop.eup %1711  ;;  %1737 = vpow2.f32 %v613_v38  ;;  %732 = vmatpush1.msra.mxu1 %v1710_v13  ;;  %v586_v23 = vsub.f32 %v2222_v0, %v2297_v37  ;;  %v584_v43 = vsub.f32 %v2214_v33, %v2297_v37  ;;  %v583_v0 = vsub.f32 %v2212_v32, %v2299_v2 }
 0x200   :  { %v1714_v17 = vpop.eup %1713  ;;  %1739 = vpow2.f32 %v611_v59  ;;  %733 = vmatprep.subr.mxu1 %v1712_v15  ;;  %v2385_v59 = vpop.trf.xlu1  ;;  %v715_v58 = vmul.f32 1.442695, %v590_v39  ;;  %v581_v33 = vsub.f32 %v2947_v10, %v2299_v2  ;;  %v580_v32 = vsub.f32 %v2206_v29, %v2297_v37 }
 0x201   :  { %v1716_v51 = vpop.eup %1715  ;;  %1741 = vpow2.f32 %v609_v57  ;;  %734 = vmatpush1.msra.mxu1 %v1714_v17  ;;  %v713_v57 = vmul.f32 1.442695, %v589_v9  ;;  %v707_v54 = vmul.f32 1.442695, %v586_v23  ;;  %v703_v19 = vmul.f32 1.442695, %v584_v43 }
 0x202   :  { %v1718_v49 = vpop.eup %1717  ;;  %1743 = vpow2.f32 %v607_v55  ;;  %735 = vmatprep.subr.mxu1 %v1716_v51  ;;  %v709_v55 = vmul.f32 1.442695, %v587_v45  ;;  %v701_v51 = vmul.f32 1.442695, %v583_v0  ;;  %v578_v25 = vsub.f32 %v2202_v27, %v2297_v37  ;;  %v2960_v9 = vld [vmem:[#allocation32_spill] sm:$0xff] }
 0x203   :  { %v1720_v48 = vpop.eup %1719  ;;  %1745 = vpow2.f32 %v605_v53  ;;  %736 = vmatpush1.msra.mxu1 %v1718_v49  ;;  %v705_v53 = vmul.f32 1.442695, %v585_v41  ;;  %v699_v5 = vmul.f32 1.442695, %v582_v11  ;;  %v577_v29 = vsub.f32 %v2199_v26, %v2299_v2  ;;  %v2964_v43 = vld [vmem:[#allocation28_spill] sm:$0xff] }
 0x204   :  { %v1722_v47 = vpop.eup %1721  ;;  %1747 = vpow2.f32 %v603_v6  ;;  %737 = vmatprep.subr.mxu1 %v1720_v48  ;;  %v2399_v17 = vpop.trf.xlu1  ;;  %v579_v6 = vsub.f32 %v2204_v28, %v2299_v2  ;;  %v697_v49 = vmul.f32 1.442695, %v581_v33  ;;  %v576_v28 = vsub.f32 %v2195_v24, %v2297_v37 }
 0x205   :  { %v1724_v46 = vpop.eup %1723  ;;  %1749 = vpow2.f32 %v601_v50  ;;  %738 = vmatpush1.msra.mxu1 %v1722_v47  ;;  %v575_v27 = vsub.f32 %v2193_v22, %v2299_v2  ;;  %v574_v47 = vsub.f32 %v2191_v21, %v2297_v37  ;;  %v691_v39 = vmul.f32 1.442695, %v578_v25  ;;  %v2961_v21 = vld [vmem:[#allocation31_spill] sm:$0xff] }
 0x206   :  { %v1726_v38 = vpop.eup %1725  ;;  %1751 = vpow2.f32 %v599_v30  ;;  %739 = vmatprep.subr.mxu1 %v1724_v46  ;;  %v695_v30 = vmul.f32 1.442695, %v580_v32  ;;  %v693_v3 = vmul.f32 1.442695, %v579_v6  ;;  %v689_v46 = vmul.f32 1.442695, %v577_v29 }
 0x207   :  { %v1728_v60 = vpop.eup %1727  ;;  %1753 = vpow2.f32 %v597_v40  ;;  %740 = vmatpush1.msra.mxu1 %v1726_v38  ;;  %v687_v38 = vmul.f32 1.442695, %v576_v28  ;;  %v571_v8 = vsub.f32 %v2961_v21, %v2299_v2  ;;  %v2967_v32 = vld [vmem:[#allocation25_spill] sm:$0xff] }
 0x208   :  { %v1730_v42 = vpop.eup %1729  ;;  %1755 = vpow2.f32 %v595_v44  ;;  %741 = vmatprep.subr.mxu1 %v1728_v60  ;;  %v2413_v40 = vpop.trf.xlu1  ;;  %v573_v44 = vsub.f32 %v2189_v20, %v2299_v2  ;;  %v685_v60 = vmul.f32 1.442695, %v575_v27  ;;  %v2962_v20 = vld [vmem:[#allocation30_spill] sm:$0xff] }
 0x209   :  { %v1732_v12 = vpop.eup %1731  ;;  %1757 = vpow2.f32 %v593_v63  ;;  %742 = vmatpush1.msra.mxu1 %v1730_v42  ;;  %v572_v63 = vsub.f32 %v2960_v9, %v2297_v37  ;;  %v570_v45 = vsub.f32 %v2962_v20, %v2297_v37  ;;  %v683_v42 = vmul.f32 1.442695, %v574_v47 }
 0x20a   :  { %v1734_v13 = vpop.eup %1733  ;;  %1759 = vpow2.f32 %v719_v61  ;;  %743 = vmatprep.subr.mxu1 %v1732_v12  ;;  %v681_v41 = vmul.f32 1.442695, %v573_v44  ;;  %v677_v11 = vmul.f32 1.442695, %v571_v8 }
 0x20b   :  { %v1736_v14 = vpop.eup %1735  ;;  %1761 = vpow2.f32 %v717_v35  ;;  %744 = vmatpush1.msra.mxu1 %v1734_v13 }
 0x20c   :  { %v1738_v15 = vpop.eup %1737  ;;  %1763 = vpow2.f32 %v715_v58  ;;  %745 = vmatprep.subr.mxu1 %v1736_v14  ;;  %v2963_v58 = vld [vmem:[#allocation29_spill] sm:$0xff]  ;;  %v679_v14 = vmul.f32 1.442695, %v572_v63 }
 0x20d   :  { %v1740_v16 = vpop.eup %1739  ;;  %1765 = vpow2.f32 %v713_v57  ;;  %746 = vmatpush1.msra.mxu1 %v1738_v15  ;;  %v569_v12 = vsub.f32 %v2963_v58, %v2299_v2  ;;  %v2427_v57 = vpop.trf.xlu1 }
 0x20e   :  { %v1742_v52 = vpop.eup %1741  ;;  %1767 = vpow2.f32 %v711_v56  ;;  %747 = vmatprep.subr.mxu1 %v1740_v16  ;;  %v568_v56 = vsub.f32 %v2964_v43, %v2297_v37  ;;  %v2966_v16 = vld [vmem:[#allocation26_spill] sm:$0xff] }
 0x20f   :  { %v1744_v31 = vpop.eup %1743  ;;  %1769 = vpow2.f32 %v709_v55  ;;  %748 = vmatpush1.msra.mxu1 %v1742_v52  ;;  %v2965_v55 = vld [vmem:[#allocation27_spill] sm:$0xff]  ;;  %v566_v33 = vsub.f32 %v2966_v16, %v2297_v37 }
 0x210   :  { %v1746_v10 = vpop.eup %1745  ;;  %1771 = vpow2.f32 %v707_v54  ;;  %749 = vmatprep.subr.mxu1 %v1744_v31  ;;  %v567_v15 = vsub.f32 %v2965_v55, %v2299_v2  ;;  %v673_v31 = vmul.f32 1.442695, %v569_v12  ;;  %v671_v25 = vmul.f32 1.442695, %v568_v56 }
 0x211   :  { %v1748_v50 = vpop.eup %1747  ;;  %1773 = vpow2.f32 %v705_v53  ;;  %750 = vmatpush1.msra.mxu1 %v1746_v10  ;;  %v675_v53 = vmul.f32 1.442695, %v570_v45  ;;  %v667_v27 = vmul.f32 1.442695, %v566_v33 }
 0x212   :  { %v1750_v34 = vpop.eup %1749  ;;  %1775 = vpow2.f32 %v703_v19  ;;  %751 = vmatprep.subr.mxu1 %v1748_v50  ;;  %v565_v19 = vsub.f32 %v2967_v32, %v2299_v2  ;;  %v2969_v50 = vld [vmem:[#allocation23_spill] sm:$0xff] }
 0x213   :  { %v1752_v48 = vpop.eup %1751  ;;  %1777 = vpow2.f32 %v701_v51  ;;  %752 = vmatpush1.msra.mxu1 %v1750_v34  ;;  %v2968_v51 = vld [vmem:[#allocation24_spill] sm:$0xff]  ;;  %v563_v29 = vsub.f32 %v2969_v50, %v2299_v2  ;;  %v2441_v34 = vpop.trf.xlu1 }
 0x214   :  { %v1754_v26 = vpop.eup %1753  ;;  %1779 = vpow2.f32 %v699_v5  ;;  %753 = vmatprep.subr.mxu1 %v1752_v48  ;;  %v564_v10 = vsub.f32 %v2968_v51, %v2297_v37 }
 0x215   :  { %v1756_v24 = vpop.eup %1755  ;;  %1781 = vpow2.f32 %v697_v49  ;;  %754 = vmatpush1.msra.mxu1 %v1754_v26  ;;  %v669_v49 = vmul.f32 1.442695, %v567_v15  ;;  %v2971_v26 = vld [vmem:[#allocation21_spill] sm:$0xff] }
 0x216   :  { %v1758_v22 = vpop.eup %1757  ;;  %1783 = vpow2.f32 %v695_v30  ;;  %755 = vmatprep.subr.mxu1 %v1756_v24  ;;  %v2970_v30 = vld [vmem:[#allocation22_spill] sm:$0xff]  ;;  %v561_v47 = vsub.f32 %v2971_v26, %v2299_v2  ;;  %v663_v44 = vmul.f32 1.442695, %v564_v10 }
 0x217   :  { %v1760_v61 = vpop.eup %1759  ;;  %1785 = vpow2.f32 %v693_v3  ;;  %756 = vmatpush1.msra.mxu1 %v1758_v22  ;;  %v562_v48 = vsub.f32 %v2970_v30, %v2297_v37  ;;  %v661_v22 = vmul.f32 1.442695, %v563_v29  ;;  %v2447_v2 = vpop.trf.xlu1  ;;  %v801_v30 = vshrl.u32 %v21_v18, 7 }
 0x218   :  { %v1762_v35 = vpop.eup %1761  ;;  %1787 = vpow2.f32 %v691_v39  ;;  %757 = vmatprep.subr.mxu1 %v1760_v61  ;;  %v665_v39 = vmul.f32 1.442695, %v565_v19 }
 0x219   :  { %v1764_v23 = vpop.eup %1763  ;;  %1789 = vpow2.f32 %v689_v46  ;;  %758 = vmatpush2.msra.mxu1 %v1762_v35  ;;  %v659_v37 = vmul.f32 1.442695, %v562_v48 }
 0x21a   :  { %v1766_v13 = vpop.eup %1765  ;;  %1791 = vpow2.f32 %v687_v38  ;;  %759 = vmatprep.subr.mxu1 %v1764_v23  ;;  %v657_v38 = vmul.f32 1.442695, %v561_v47 }
 0x21b   :  { %v1768_v0 = vpop.eup %1767  ;;  %1793 = vpow2.f32 %v685_v60  ;;  %760 = vmatpush2.msra.mxu1 %v1766_v13  ;;  %v846_v45 = vpop.trf.xlu1 }
 0x21c   :  { %v1770_v54 = vpop.eup %1769  ;;  %1795 = vpow2.f32 %v683_v42  ;;  %761 = vmatprep.subr.mxu1 %v1768_v0 }
 0x21d   :  { %v1772_v52 = vpop.eup %1771  ;;  %1797 = vpow2.f32 %v681_v41  ;;  %762 = vmatpush2.msra.mxu1 %v1770_v54  ;;  %v2972_v54 = vmov 0.0  }
 0x21e   :  { %v1774_v6 = vpop.eup %1773  ;;  %1799 = vpow2.f32 %v679_v14  ;;  %763 = vmatprep.subr.mxu1 %v1772_v52 }
 0x21f   :  { %v1776_v5 = vpop.eup %1775  ;;  %1801 = vpow2.f32 %v677_v11  ;;  %764 = vmatpush2.msra.mxu1 %v1774_v6  ;;  %v847_v43 = vpop.trf.xlu1 }
 0x220   :  { %v1778_v28 = vpop.eup %1777  ;;  %1803 = vpow2.f32 %v675_v53  ;;  %765 = vmatprep.subr.mxu1 %v1776_v5 }
 0x221   :  { %v1780_v3 = vpop.eup %1779  ;;  %1805 = vpow2.f32 %v673_v31  ;;  %766 = vmatpush2.msra.mxu1 %v1778_v28 }
 0x222   :  { %v1782_v24 = vpop.eup %1781  ;;  %1807 = vpow2.f32 %v671_v25  ;;  %767 = vmatprep.subr.mxu1 %v1780_v3  ;;  %v2537_v3 = vsub.s32 4, %v801_v30 }
 0x223   :  { %v1784_v46 = vpop.eup %1783  ;;  %1809 = vpow2.f32 %v669_v49  ;;  %768 = vmatpush2.msra.mxu1 %v1782_v24  ;;  %v848_v11 = vpop.trf.xlu1 }
 0x224   :  { %v1786_v9 = vpop.eup %1785  ;;  %1811 = vpow2.f32 %v667_v27  ;;  %769 = vmatprep.subr.mxu1 %v1784_v46  ;;  %2978 = vst [vmem:[#allocation19_spill] sm:$0xff] %v2537_v3 }
 0x225   :  { %v1788_v63 = vpop.eup %1787  ;;  %1813 = vpow2.f32 %v665_v39  ;;  %770 = vmatpush2.msra.mxu1 %v1786_v9 }
 0x226   :  { %v1790_v61 = vpop.eup %1789  ;;  %1815 = vpow2.f32 %v663_v44  ;;  %771 = vmatprep.subr.mxu1 %v1788_v63 }
 0x227   :  { %v1792_v21 = vpop.eup %1791  ;;  %1817 = vpow2.f32 %v661_v22  ;;  %772 = vmatpush2.msra.mxu1 %v1790_v61  ;;  %v849_v16 = vpop.trf.xlu1 }
 0x228   :  { %v1794_v8 = vpop.eup %1793  ;;  %1819 = vpow2.f32 %v659_v37  ;;  %773 = vmatprep.subr.mxu1 %v1792_v21 }
 0x229   :  { %v1796_v60 = vpop.eup %1795  ;;  %1821 = vpow2.f32 %v657_v38  ;;  %774 = vmatpush2.msra.mxu1 %v1794_v8  ;;  %v2983_v38 = vld [vmem:[#allocation9_spill] sm:$0xff]  ;;  %v2985_v8 = vld [vmem:[#allocation10_spill] sm:$0xff] }
 0x22a   :  { %v1798_v35 = vpop.eup %1797  ;;  %775 = vmatprep.subr.mxu1 %v1796_v60 }
 0x22b   :  { %v1800_v20 = vpop.eup %1799  ;;  %776 = vmatpush2.msra.mxu1 %v1798_v35 }
 0x22c   :  { %v1802_v42 = vpop.eup %1801  ;;  %777 = vmatprep.subr.mxu1 %v1800_v20 }
 0x22d   :  { %v1804_v23 = vpop.eup %1803  ;;  %778 = vmatpush2.msra.mxu1 %v1802_v42 }
 0x22e   :  { %v1806_v58 = vpop.eup %1805  ;;  %779 = vmatprep.subr.mxu1 %v1804_v23 }
 0x22f   :  { %v1808_v12 = vpop.eup %1807  ;;  %780 = vmatpush2.msra.mxu1 %v1806_v58 }
 0x230   :  { %v1810_v41 = vpop.eup %1809  ;;  %781 = vmatprep.subr.mxu1 %v1808_v12 }
 0x231   :  { %v1812_v13 = vpop.eup %1811  ;;  %782 = vmatpush2.msra.mxu1 %v1810_v41 }
 0x232   :  { %v1814_v56 = vpop.eup %1813  ;;  %783 = vmatprep.subr.mxu1 %v1812_v13 }
 0x233   :  { %v1816_v14 = vpop.eup %1815  ;;  %784 = vmatpush2.msra.mxu1 %v1814_v56 }
 0x234   :  { %v1818_v0 = vpop.eup %1817  ;;  %785 = vmatprep.subr.mxu1 %v1816_v14 }
 0x235   :  { %v1820_v55 = vpop.eup %1819  ;;  %786 = vmatpush2.msra.mxu1 %v1818_v0 }
 0x236   :  { %v1822_v15 = vpop.eup %1821  ;;  %787 = vmatprep.subr.mxu1 %v1820_v55 }
 0x237   :  { %788 = vmatpush2.msra.mxu1 %v1822_v15 }
 0x238   :  { %790 = vmatmul.mubr.f32.vlgmr.msra.gmra.mxu1 %v2309_v1  ;;  %1657 = vmatprep.subr.msk.mxu1 %vm191_vm0, %v2949_v36  ;;  %v850_v1 = vpop.trf.xlu1 }
 0x239   :  { %1658 = vmatpush1.msk.msra.mxu1 %vm191_vm0, %v2950_v7  ;;  %1050 = vmatprep.mubr.f32.mxu1 %v2972_v54 }
 0x23c   :  { %1659 = vmatmul.mubr.msk.f32.vlgmr.msra.gmra.mxu1 %vm94_vm1, %v2357_v62  ;;  %v851_v36 = vpop.trf.xlu1 }
 0x23d   :  { %1056 = vmatprep.mubr.f32.mxu1 %v2972_v54 }
 0x240   :  { %1660 = vmatmul.mubr.msk.f32.gmra.mxu1 %vm94_vm1, %v2371_v4  ;;  %v852_v7 = vpop.trf.xlu1 }
 0x241   :  { %1062 = vmatprep.mubr.f32.mxu1 %v2972_v54 }
 0x244   :  { %1661 = vmatmul.mubr.msk.f32.gmra.mxu1 %vm94_vm1, %v2385_v59  ;;  %v853_v62 = vpop.trf.xlu1 }
 0x245   :  { %1068 = vmatprep.mubr.f32.mxu1 %v2972_v54 }
 0x248   :  { %1662 = vmatmul.mubr.msk.f32.gmra.mxu1 %vm94_vm1, %v2399_v17  ;;  %v870_v4 = vpop.trf.xlu1 }
 0x249   :  { %1074 = vmatprep.mubr.f32.mxu1 %v2972_v54 }
 0x24c   :  { %1663 = vmatmul.mubr.msk.f32.gmra.mxu1 %vm94_vm1, %v2413_v40  ;;  %v871_v59 = vpop.trf.xlu1 }
 0x24d   :  { %1080 = vmatprep.mubr.f32.mxu1 %v2972_v54 }
 0x250   :  { %1664 = vmatmul.mubr.msk.f32.gmra.mxu1 %vm94_vm1, %v2427_v57  ;;  %v872_v17 = vpop.trf.xlu1 }
 0x251   :  { %1086 = vmatprep.mubr.f32.mxu1 %v2972_v54 }
 0x254   :  { %1665 = vmatmul.mubr.msk.f32.gmra.mxu1 %vm94_vm1, %v2441_v34  ;;  %v873_v40 = vpop.trf.xlu1 }
 0x255   :  { %1092 = vmatprep.mubr.f32.mxu1 %v2972_v54 }
 0x258   :  { %1666 = vmatmul.mubr.msk.f32.gmra.mxu1 %vm94_vm1, %v2447_v2  ;;  %v874_v57 = vpop.trf.xlu1 }
 0x259   :  { %1098 = vmatprep.mubr.f32.mxu1 %v2972_v54 }
 0x25c   :  { %1667 = vmatmul.mubr.msk.f32.gmra.mxu1 %vm94_vm1, %v846_v45  ;;  %v875_v33 = vpop.trf.xlu1 }
 0x25d   :  { %1104 = vmatprep.mubr.f32.mxu1 %v2972_v54 }
 0x260   :  { %1668 = vmatmul.mubr.msk.f32.gmra.mxu1 %vm94_vm1, %v847_v43  ;;  %v876_v53 = vpop.trf.xlu1 }
 0x261   :  { %1110 = vmatprep.mubr.f32.mxu1 %v2972_v54 }
 0x264   :  { %1669 = vmatmul.mubr.msk.f32.gmra.mxu1 %vm94_vm1, %v848_v11  ;;  %v877_v52 = vpop.trf.xlu1 }
 0x265   :  { %1116 = vmatprep.mubr.f32.mxu1 %v2972_v54 }
 0x268   :  { %1670 = vmatmul.mubr.msk.f32.gmra.mxu1 %vm94_vm1, %v849_v16  ;;  %v878_v32 = vpop.trf.xlu1 }
 0x269   :  { %1122 = vmatprep.mubr.f32.mxu1 %v2972_v54 }
 0x26c   :  { %1671 = vmatmul.mubr.msk.f32.gmra.mxu1 %vm94_vm1, %v850_v1  ;;  %v879_v19 = vpop.trf.xlu1 }
 0x26d   :  { %1128 = vmatprep.mubr.f32.mxu1 %v2972_v54 }
 0x270   :  { %1672 = vmatmul.mubr.msk.f32.gmra.mxu1 %vm94_vm1, %v851_v36  ;;  %v880_v31 = vpop.trf.xlu1 }
 0x271   :  { %1134 = vmatprep.mubr.f32.mxu1 %v2972_v54 }
 0x274   :  { %1673 = vmatmul.mubr.msk.f32.gmra.mxu1 %vm94_vm1, %v852_v7  ;;  %v881_v6 = vpop.trf.xlu1 }
 0x275   :  { %1140 = vmatprep.mubr.f32.mxu1 %v2972_v54 }
 0x278   :  { %1674 = vmatmul.mubr.msk.f32.gmra.mxu1 %vm94_vm1, %v853_v62  ;;  %v882_v51 = vpop.trf.xlu1 }
 0x279   :  { %1146 = vmatprep.mubr.f32.mxu1 %v2972_v54 }
 0x27c   :  { %1675 = vmatmul.mubr.msk.f32.gmra.mxu1 %vm94_vm1, %v870_v4  ;;  %v883_v10 = vpop.trf.xlu1 }
 0x27d   :  { %1152 = vmatprep.mubr.f32.mxu1 %v2972_v54 }
 0x280   :  { %1676 = vmatmul.mubr.msk.f32.gmra.mxu1 %vm94_vm1, %v871_v59  ;;  %v884_v25 = vpop.trf.xlu1 }
 0x281   :  { %1158 = vmatprep.mubr.f32.mxu1 %v2972_v54 }
 0x284   :  { %1677 = vmatmul.mubr.msk.f32.gmra.mxu1 %vm94_vm1, %v872_v17  ;;  %v885_v5 = vpop.trf.xlu1 }
 0x285   :  { %1164 = vmatprep.mubr.f32.mxu1 %v2972_v54 }
 0x288   :  { %1678 = vmatmul.mubr.msk.f32.gmra.mxu1 %vm94_vm1, %v873_v40 }
 0x289   :  { %1170 = vmatprep.mubr.f32.mxu1 %v2972_v54 }
 0x28c   :  { %1679 = vmatmul.mubr.msk.f32.gmra.mxu1 %vm94_vm1, %v874_v57 }
 0x28d   :  { %1176 = vmatprep.mubr.f32.mxu1 %v2972_v54 }
 0x290   :  { %1680 = vmatmul.mubr.msk.f32.gmra.mxu1 %vm94_vm1, %v875_v33 }
 0x291   :  { %1182 = vmatprep.mubr.f32.mxu1 %v2972_v54 }
 0x294   :  { %1681 = vmatmul.mubr.msk.f32.gmra.mxu1 %vm94_vm1, %v876_v53 }
 0x295   :  { %1188 = vmatprep.mubr.f32.mxu1 %v2972_v54 }
 0x298   :  { %1682 = vmatmul.mubr.msk.f32.gmra.mxu1 %vm94_vm1, %v877_v52 }
 0x299   :  { %1194 = vmatprep.mubr.f32.mxu1 %v2972_v54 }
 0x29c   :  { %1683 = vmatmul.mubr.msk.f32.gmra.mxu1 %vm94_vm1, %v878_v32 }
 0x29d   :  { %1200 = vmatprep.mubr.f32.mxu1 %v2972_v54 }
 0x2a0   :  { %1684 = vmatmul.mubr.msk.f32.gmra.mxu1 %vm94_vm1, %v879_v19 }
 0x2a1   :  { %1206 = vmatprep.mubr.f32.mxu1 %v2972_v54 }
 0x2a4   :  { %1685 = vmatmul.mubr.msk.f32.gmra.mxu1 %vm94_vm1, %v880_v31 }
 0x2a5   :  { %1212 = vmatprep.mubr.f32.mxu1 %v2972_v54 }
 0x2a8   :  { %1686 = vmatmul.mubr.msk.f32.gmra.mxu1 %vm94_vm1, %v881_v6 }
 0x2a9   :  { %1218 = vmatprep.mubr.f32.mxu1 %v2972_v54 }
 0x2ac   :  { %1687 = vmatmul.mubr.msk.f32.gmra.mxu1 %vm94_vm1, %v882_v51 }
 0x2ad   :  { %1224 = vmatprep.mubr.f32.mxu1 %v2972_v54 }
 0x2b0   :  { %1688 = vmatmul.mubr.msk.f32.gmra.mxu1 %vm94_vm1, %v883_v10 }
 0x2b1   :  { %1230 = vmatprep.mubr.f32.mxu1 %v2972_v54 }
 0x2b4   :  { %1689 = vmatmul.mubr.msk.f32.gmra.mxu1 %vm94_vm1, %v884_v25 }
 0x2b5   :  { %1236 = vmatprep.mubr.f32.mxu1 %v2972_v54 }
 0x2b8   :  { %1690 = vmatmul.mubr.msk.f32.gmra.mxu1 %vm94_vm1, %v885_v5 }
 0x2f8   :  { %v791_v50 = vpop.f32.mrf.mxu1 }
 0x2f9   :  { %1823 = vrcp.f32 %v791_v50 }
 0x2fa   :  { %v793_v29 = vpop.f32.mrf.mxu1 }
 0x2fb   :  { %1825 = vrcp.f32 %v793_v29 }
 0x2fc   :  { %v2526_v49 = vpop.f32.mrf.mxu1 }
 0x2fd   :  { %2973 = vst [vmem:[#allocation34_spill] sm:$0xff] %v2526_v49 }
 0x2fe   :  { %v2528_v34 = vpop.f32.mrf.mxu1 }
 0x2ff   :  { %2974 = vst [vmem:[#allocation35_spill] sm:$0xff] %v2528_v34 }
 0x300   :  { %v2530_v28 = vpop.f32.mrf.mxu1 }
 0x301   :  { %2975 = vst [vmem:[#allocation33_spill] sm:$0xff] %v2530_v28 }
 0x302   :  { %v2533_v48 = vpop.f32.mrf.mxu1 }
 0x303   :  { %2976 = vst [vmem:[#allocation11_spill] sm:$0xff] %v2533_v48 }
 0x304   :  { %v2535_v27 = vpop.f32.mrf.mxu1 }
 0x305   :  { %2977 = vst [vmem:[#allocation20_spill] sm:$0xff] %v2535_v27 }
 0x306   :  { %v1824_v26 = vpop.eup %1823  ;;  %v2539_v47 = vpop.f32.mrf.mxu1 }
 0x307   :  { %2979 = vst [vmem:[#allocation18_spill] sm:$0xff] %v2539_v47  ;;  %v798_v39 = vmul.f32 0.002, %v1824_v26 }
 0x308   :  { %v1826_v24 = vpop.eup %1825  ;;  %v2541_v44 = vpop.f32.mrf.mxu1 }
 0x309   :  { %2980 = vst [vmem:[#allocation17_spill] sm:$0xff] %v2541_v44  ;;  %v803_v46 = vrot.slane %v798_v39, %v2537_v3  ;;  %v799_v22 = vmul.f32 0.002, %v1826_v24 }
 0x30a   :  { %v2544_v9 = vpop.f32.mrf.mxu1 }
 0x30b   :  { %2981 = vst [vmem:[#allocation16_spill] sm:$0xff] %v2544_v9  ;;  %v808_v37 = vmul.f32 %v803_v46, %v791_v50  ;;  %v807_v18 = vrot.slane %v799_v22, %v2537_v3 }
 0x30c   :  { %v2547_v63 = vpop.f32.mrf.mxu1 }
 0x30d   :  { %2982 = vst [vmem:[#allocation15_spill] sm:$0xff] %v2547_v63  ;;  %v810_v2 = vadd.f32 %v808_v37, %v2983_v38  ;;  %v809_v61 = vmul.f32 %v807_v18, %v793_v29  ;;  %v1281_v18 = vmax.f32 %v2533_v48, %v2544_v9  ;;  %v1244_v38 = vmax.f32 %v2530_v28, %v2541_v44 }
 0x30e   :  { %v2550_v21 = vpop.f32.mrf.mxu1 }
 0x30f   :  { %2984 = vst [vmem:[#allocation14_spill] sm:$0xff] %v2550_v21  ;;  %812 = vst [vmem:[#allocation6] sm:$0xf] %v810_v2  ;;  %v811_v60 = vadd.f32 %v809_v61, %v2985_v8  ;;  %v1280_v61 = vmax.f32 %v2528_v34, %v2539_v47 }
 0x310   :  { %v2553_v35 = vpop.f32.mrf.mxu1 }
 0x311   :  { %813 = vst [vmem:[#allocation6 + $0x8] sm:$0xf] %v811_v60  ;;  %v1243_v60 = vmax.f32 %v2526_v49, %v2535_v27  ;;  %v1246_v3 = vmax.f32 %v1244_v38, %v2553_v35 }
 0x312   :  { %v2555_v20 = vpop.f32.mrf.mxu1 }
 0x313   :  { %v1283_v8 = vmax.f32 %v1281_v18, %v2555_v20  ;;  %v1245_v48 = vmax.f32 %v1243_v60, %v2547_v63 }
 0x314   :  { %v2557_v45 = vpop.f32.mrf.mxu1 }
 0x315   :  { %v1247_v18 = vmax.f32 %v1245_v48, %v2557_v45 }
 0x316   :  { %v2559_v42 = vpop.f32.mrf.mxu1 }
 0x318   :  { %v2561_v23 = vpop.f32.mrf.mxu1 }
 0x319   :  { %v1248_v28 = vmax.f32 %v1246_v3, %v2561_v23 }
 0x31a   :  { %v2563_v58 = vpop.f32.mrf.mxu1 }
 0x31c   :  { %v2565_v12 = vpop.f32.mrf.mxu1 }
 0x31e   :  { %v2567_v41 = vpop.f32.mrf.mxu1 }
 0x320   :  { %v2569_v13 = vpop.f32.mrf.mxu1 }
 0x321   :  { %v1250_v49 = vmax.f32 %v1248_v28, %v2569_v13 }
 0x322   :  { %v2571_v43 = vpop.f32.mrf.mxu1 }
 0x324   :  { %v2573_v56 = vpop.f32.mrf.mxu1 }
 0x326   :  { %v2575_v14 = vpop.f32.mrf.mxu1 }
 0x328   :  { %v2577_v0 = vpop.f32.mrf.mxu1 }
 0x329   :  { %v1252_v60 = vmax.f32 %v1250_v49, %v2577_v0 }
 0x32a   :  { %v2579_v55 = vpop.f32.mrf.mxu1 }
 0x32c   :  { %v2581_v15 = vpop.f32.mrf.mxu1 }
 0x32e   :  { %v2583_v11 = vpop.f32.mrf.mxu1 }
 0x330   :  { %v2585_v54 = vpop.f32.mrf.mxu1 }
 0x331   :  { %v1254_v48 = vmax.f32 %v1252_v60, %v2585_v54 }
 0x332   :  { %v2587_v16 = vpop.f32.mrf.mxu1 }
 0x334   :  { %v2589_v1 = vpop.f32.mrf.mxu1 }
 0x336   :  { %v2591_v36 = vpop.f32.mrf.mxu1 }
 0x338   :  { %v2593_v7 = vpop.f32.mrf.mxu1 }
 0x33a   :  { %v2595_v62 = vpop.f32.mrf.mxu1 }
 0x33c   :  { %v2597_v4 = vpop.f32.mrf.mxu1 }
 0x33d   :  { %2986 = vst [vmem:[#allocation13_spill] sm:$0xff] %v2597_v4 }
 0x33e   :  { %v2599_v59 = vpop.f32.mrf.mxu1 }
 0x33f   :  { %2987 = vst [vmem:[#allocation12_spill] sm:$0xff] %v2599_v59 }
 0x340   :  { %v2601_v17 = vpop.f32.mrf.mxu1 }
 0x341   :  { %2988 = vst [vmem:[#allocation32_spill] sm:$0xff] %v2601_v17 }
 0x342   :  { %v2603_v40 = vpop.f32.mrf.mxu1 }
 0x343   :  { %2989 = vst [vmem:[#allocation31_spill] sm:$0xff] %v2603_v40 }
 0x344   :  { %v2605_v57 = vpop.f32.mrf.mxu1 }
 0x345   :  { %2990 = vst [vmem:[#allocation30_spill] sm:$0xff] %v2605_v57 }
 0x346   :  { %v2607_v33 = vpop.f32.mrf.mxu1 }
 0x347   :  { %2991 = vst [vmem:[#allocation29_spill] sm:$0xff] %v2607_v33 }
 0x348   :  { %v2609_v53 = vpop.f32.mrf.mxu1 }
 0x349   :  { %2992 = vst [vmem:[#allocation28_spill] sm:$0xff] %v2609_v53 }
 0x34a   :  { %v2611_v52 = vpop.f32.mrf.mxu1 }
 0x34b   :  { %2993 = vst [vmem:[#allocation27_spill] sm:$0xff] %v2611_v52 }
 0x34c   :  { %v2613_v32 = vpop.f32.mrf.mxu1 }
 0x34d   :  { %2994 = vst [vmem:[#allocation26_spill] sm:$0xff] %v2613_v32 }
 0x34e   :  { %v2615_v19 = vpop.f32.mrf.mxu1 }
 0x34f   :  { %2995 = vst [vmem:[#allocation25_spill] sm:$0xff] %v2615_v19 }
 0x350   :  { %v2617_v31 = vpop.f32.mrf.mxu1 }
 0x351   :  { %2996 = vst [vmem:[#allocation24_spill] sm:$0xff] %v2617_v31 }
 0x352   :  { %v2619_v6 = vpop.f32.mrf.mxu1 }
 0x354   :  { %v2621_v51 = vpop.f32.mrf.mxu1 }
 0x356   :  { %v2623_v10 = vpop.f32.mrf.mxu1 }
 0x358   :  { %v2625_v25 = vpop.f32.mrf.mxu1 }
 0x35a   :  { %v2627_v5 = vpop.f32.mrf.mxu1 }
 0x35c   :  { %v2629_v50 = vpop.f32.mrf.mxu1 }
 0x35e   :  { %v2631_v29 = vpop.f32.mrf.mxu1 }
 0x360   :  { %v2633_v30 = vpop.f32.mrf.mxu1 }
 0x362   :  { %v2635_v26 = vpop.f32.mrf.mxu1 }
 0x364   :  { %v2637_v39 = vpop.f32.mrf.mxu1 }
 0x365   :  { %2997 = vst [vmem:[#allocation23_spill] sm:$0xff] %v2637_v39  ;;  %v1285_v39 = vmax.f32 %v1283_v8, %v2563_v58  ;;  %v1249_v8 = vmax.f32 %v1247_v18, %v2565_v12  ;;  %v1256_v18 = vmax.f32 %v1254_v48, %v2593_v7  ;;  %v1512_v48 = vld [vmem:[#allocation2 + $0x8] sm:$0x1f] }
 0x366   :  { %v2639_v24 = vpop.f32.mrf.mxu1  ;;  %1577 = vmatprep.mubr.f32.mxu0 %v1512_v48 }
 0x367   :  { %v1287_v34 = vmax.f32 %v1285_v39, %v2571_v43  ;;  %v1251_v39 = vmax.f32 %v1249_v8, %v2573_v56  ;;  %v1258_v8 = vmax.f32 %v1256_v18, %v2601_v17 }
 0x368   :  { %v2641_v46 = vpop.f32.mrf.mxu1 }
 0x36a   :  { %v2643_v22 = vpop.f32.mrf.mxu1 }
 0x36c   :  { %v2645_v37 = vpop.f32.mrf.mxu1 }
 0x36d   :  { %2998 = vst [vmem:[#allocation22_spill] sm:$0xff] %v2645_v37  ;;  %v1282_v37 = vmax.f32 %v1280_v61, %v2550_v21  ;;  %v1289_v61 = vmax.f32 %v1287_v34, %v2579_v55  ;;  %v1253_v34 = vmax.f32 %v1251_v39, %v2581_v15  ;;  %v1260_v39 = vmax.f32 %v1258_v8, %v2609_v53 }
 0x36e   :  { %v2651_v2 = vpop.f32.mrf.mxu1 }
 0x36f   :  { %v1284_v9 = vmax.f32 %v1282_v37, %v2559_v42  ;;  %v1291_v37 = vmax.f32 %v1289_v61, %v2587_v16  ;;  %v1255_v61 = vmax.f32 %v1253_v34, %v2589_v1  ;;  %v1262_v34 = vmax.f32 %v1260_v39, %v2617_v31 }
 0x370   :  { %v2663_v44 = vpop.f32.mrf.mxu1 }
 0x371   :  { %v1286_v38 = vmax.f32 %v1284_v9, %v2567_v41  ;;  %v1293_v9 = vmax.f32 %v1291_v37, %v2595_v62  ;;  %v1257_v37 = vmax.f32 %v1255_v61, %v2597_v4  ;;  %v1264_v61 = vmax.f32 %v1262_v34, %v2625_v25 }
 0x372   :  { %v2673_v27 = vpop.f32.mrf.mxu1 }
 0x373   :  { %v1288_v3 = vmax.f32 %v1286_v38, %v2575_v14  ;;  %v1295_v38 = vmax.f32 %v1293_v9, %v2603_v40  ;;  %v1259_v9 = vmax.f32 %v1257_v37, %v2605_v57  ;;  %v1266_v37 = vmax.f32 %v1264_v61, %v2633_v30 }
 0x374   :  { %v2683_v47 = vpop.f32.mrf.mxu1  ;;  %v3000_v17 = vld [vmem:[#allocation22_spill] sm:$0xff] }
 0x375   :  { %v1290_v28 = vmax.f32 %v1288_v3, %v2583_v11  ;;  %v1297_v3 = vmax.f32 %v1295_v38, %v2611_v52  ;;  %v1261_v38 = vmax.f32 %v1259_v9, %v2613_v32 }
 0x376   :  { %v2693_v63 = vpop.f32.mrf.mxu1 }
 0x377   :  { %v1292_v49 = vmax.f32 %v1290_v28, %v2591_v36  ;;  %v1299_v28 = vmax.f32 %v1297_v3, %v2619_v6  ;;  %v1263_v3 = vmax.f32 %v1261_v38, %v2621_v51 }
 0x378   :  { %v2703_v8 = vpop.f32.mrf.mxu1 }
 0x379   :  { %v1294_v60 = vmax.f32 %v1292_v49, %v2599_v59  ;;  %v1301_v49 = vmax.f32 %v1299_v28, %v2627_v5  ;;  %v1265_v48 = vmax.f32 %v1263_v3, %v2629_v50  ;;  %v1268_v28 = vmax.f32 %v1266_v37, %v2641_v46  ;;  %v2999_v59 = vld [vmem:[#allocation23_spill] sm:$0xff] }
 0x37a   :  { %v2713_v9 = vpop.f32.mrf.mxu1 }
 0x37b   :  { %v1296_v21 = vmax.f32 %v1294_v60, %v2607_v33  ;;  %v1303_v60 = vmax.f32 %v1301_v49, %v2635_v26  ;;  %v1267_v49 = vmax.f32 %v1265_v48, %v2999_v59  ;;  %v1270_v38 = vmax.f32 %v1268_v28, %v2663_v44 }
 0x37d   :  { %v1298_v18 = vmax.f32 %v1296_v21, %v2615_v19  ;;  %v1305_v21 = vmax.f32 %v1303_v60, %v2643_v22  ;;  %v1269_v60 = vmax.f32 %v1267_v49, %v3000_v17  ;;  %v1272_v3 = vmax.f32 %v1270_v38, %v2703_v8 }
 0x37f   :  { %v1300_v4 = vmax.f32 %v1298_v18, %v2623_v10  ;;  %v1307_v18 = vmax.f32 %v1305_v21, %v2673_v27  ;;  %v1271_v40 = vmax.f32 %v1269_v60, %v2683_v47 }
 0x381   :  { %v1302_v39 = vmax.f32 %v1300_v4, %v2631_v29  ;;  %v1309_v4 = vmax.f32 %v1307_v18, %v2713_v9 }
 0x383   :  { %v1304_v34 = vmax.f32 %v1302_v39, %v2639_v24  ;;  %v1273_v39 = vmax.f32 %v1271_v40, %v1272_v3 }
 0x385   :  { %v1306_v61 = vmax.f32 %v1304_v34, %v2651_v2  ;;  %v1274_v21 = vrot.slane %v1273_v39, 4 }
 0x387   :  { %v1308_v37 = vmax.f32 %v1306_v61, %v2693_v63  ;;  %v1275_v48 = vmax.f32 %v1273_v39, %v1274_v21 }
 0x389   :  { %v1310_v57 = vmax.f32 %v1308_v37, %v1309_v4  ;;  %v1276_v28 = vrot.slane %v1275_v48, 2 }
 0x38b   :  { %v1311_v33 = vrot.slane %v1310_v57, 4  ;;  %v1277_v34 = vmax.f32 %v1275_v48, %v1276_v28 }
 0x38d   :  { %v1312_v53 = vmax.f32 %v1310_v57, %v1311_v33  ;;  %v1278_v18 = vrot.slane %v1277_v34, 1 }
 0x38f   :  { %v1313_v52 = vrot.slane %v1312_v53, 2  ;;  %v2727_v49 = vmax.f32 %v1277_v34, %v1278_v18 }
 0x391   :  { %v1314_v32 = vmax.f32 %v1312_v53, %v1313_v52  ;;  %v1347_v40 = vsub.f32 %v2593_v7, %v2727_v49  ;;  %v1345_v33 = vsub.f32 %v2589_v1, %v2727_v49  ;;  %v1341_v7 = vsub.f32 %v2581_v15, %v2727_v49 }
 0x393   :  { %v1315_v19 = vrot.slane %v1314_v32, 1  ;;  %v1437_v4 = vmul.f32 1.442695, %v1345_v33  ;;  %v1429_v15 = vmul.f32 1.442695, %v1341_v7  ;;  %v3003_v7 = vld [vmem:[#allocation16_spill] sm:$0xff] }
 0x395   :  { %v2725_v31 = vmax.f32 %v1314_v32, %v1315_v19  ;;  %v1343_v32 = vsub.f32 %v2585_v54, %v2727_v49  ;;  %v1441_v19 = vmul.f32 1.442695, %v1347_v40 }
 0x397   :  { %v1348_v38 = vsub.f32 %v2595_v62, %v2725_v31  ;;  %v1346_v57 = vsub.f32 %v2591_v36, %v2725_v31  ;;  %v1344_v53 = vsub.f32 %v2587_v16, %v2725_v31  ;;  %v1342_v62 = vsub.f32 %v2583_v11, %v2725_v31 }
 0x398   :  { %v1340_v36 = vsub.f32 %v2579_v55, %v2725_v31  ;;  %v1339_v16 = vsub.f32 %v2577_v0, %v2727_v49  ;;  %v1433_v60 = vmul.f32 1.442695, %v1343_v32  ;;  %v1338_v54 = vsub.f32 %v2575_v14, %v2725_v31 }
 0x399   :  { %v1443_v52 = vmul.f32 1.442695, %v1348_v38  ;;  %v1439_v61 = vmul.f32 1.442695, %v1346_v57  ;;  %v1435_v1 = vmul.f32 1.442695, %v1344_v53  ;;  %v1337_v11 = vsub.f32 %v2573_v56, %v2727_v49 }
 0x39a   :  { %v1431_v3 = vmul.f32 1.442695, %v1342_v62  ;;  %v1336_v55 = vsub.f32 %v2571_v43, %v2725_v31  ;;  %v1427_v37 = vmul.f32 1.442695, %v1340_v36  ;;  %v1335_v0 = vsub.f32 %v2569_v13, %v2727_v49 }
 0x39b   :  { %1827 = vpow2.f32 %v1443_v52  ;;  %v1425_v39 = vmul.f32 1.442695, %v1339_v16  ;;  %v1334_v14 = vsub.f32 %v2567_v41, %v2725_v31  ;;  %v1423_v21 = vmul.f32 1.442695, %v1338_v54 }
 0x39c   :  { %1829 = vpow2.f32 %v1441_v19  ;;  %v1333_v56 = vsub.f32 %v2565_v12, %v2727_v49  ;;  %v1421_v48 = vmul.f32 1.442695, %v1337_v11  ;;  %v1332_v43 = vsub.f32 %v2563_v58, %v2725_v31  ;;  %v3002_v19 = vld [vmem:[#allocation15_spill] sm:$0xff] }
 0x39d   :  { %1831 = vpow2.f32 %v1439_v61  ;;  %v1419_v28 = vmul.f32 1.442695, %v1336_v55  ;;  %v1331_v13 = vsub.f32 %v2561_v23, %v2727_v49  ;;  %v1417_v34 = vmul.f32 1.442695, %v1335_v0 }
 0x39e   :  { %1833 = vpow2.f32 %v1437_v4  ;;  %v1330_v41 = vsub.f32 %v2559_v42, %v2725_v31  ;;  %v1415_v18 = vmul.f32 1.442695, %v1334_v14  ;;  %v1329_v12 = vsub.f32 %v2557_v45, %v2727_v49  ;;  %v3001_v42 = vld [vmem:[#allocation14_spill] sm:$0xff] }
 0x39f   :  { %1835 = vpow2.f32 %v1435_v1  ;;  %v1413_v38 = vmul.f32 1.442695, %v1333_v56  ;;  %v1328_v58 = vsub.f32 %v2555_v20, %v2725_v31  ;;  %v1411_v40 = vmul.f32 1.442695, %v1332_v43  ;;  %v3004_v1 = vld [vmem:[#allocation17_spill] sm:$0xff] }
 0x3a0   :  { %1837 = vpow2.f32 %v1433_v60  ;;  %v1327_v23 = vsub.f32 %v2553_v35, %v2727_v49  ;;  %v1409_v33 = vmul.f32 1.442695, %v1331_v13  ;;  %v1326_v52 = vsub.f32 %v3001_v42, %v2725_v31 }
 0x3a1   :  { %1839 = vpow2.f32 %v1431_v3  ;;  %v1407_v32 = vmul.f32 1.442695, %v1330_v41  ;;  %v1325_v62 = vsub.f32 %v3002_v19, %v2727_v49  ;;  %v1405_v20 = vmul.f32 1.442695, %v1329_v12  ;;  %v3005_v3 = vld [vmem:[#allocation18_spill] sm:$0xff] }
 0x3a2   :  { %1841 = vpow2.f32 %v1429_v15  ;;  %v1324_v35 = vsub.f32 %v3003_v7, %v2725_v31  ;;  %v1403_v4 = vmul.f32 1.442695, %v1328_v58  ;;  %v1323_v16 = vsub.f32 %v3004_v1, %v2727_v49 }
 0x3a3   :  { %1843 = vpow2.f32 %v1427_v37  ;;  %v1401_v60 = vmul.f32 1.442695, %v1327_v23  ;;  %v1322_v11 = vsub.f32 %v3005_v3, %v2725_v31  ;;  %v1399_v15 = vmul.f32 1.442695, %v1326_v52  ;;  %v3006_v37 = vld [vmem:[#allocation20_spill] sm:$0xff] }
 0x3a4   :  { %1845 = vpow2.f32 %v1425_v39  ;;  %v1321_v0 = vsub.f32 %v3006_v37, %v2727_v49  ;;  %v1397_v39 = vmul.f32 1.442695, %v1325_v62  ;;  %v1378_v62 = vsub.f32 %v2693_v63, %v2725_v31 }
 0x3a5   :  { %1847 = vpow2.f32 %v1423_v21  ;;  %v3007_v21 = vld [vmem:[#allocation11_spill] sm:$0xff]  ;;  %v1375_v63 = vsub.f32 %v2663_v44, %v2727_v49  ;;  %v1372_v44 = vsub.f32 %v2643_v22, %v2725_v31  ;;  %v1369_v22 = vsub.f32 %v2999_v59, %v2727_v49 }
 0x3a6   :  { %1849 = vpow2.f32 %v1421_v48  ;;  %v1320_v56 = vsub.f32 %v3007_v21, %v2725_v31  ;;  %v1395_v48 = vmul.f32 1.442695, %v1324_v35  ;;  %v1389_v23 = vmul.f32 1.442695, %v1321_v0 }
 0x3a7   :  { %1851 = vpow2.f32 %v1419_v28  ;;  %v3008_v28 = vld [vmem:[#allocation33_spill] sm:$0xff]  ;;  %v1497_v37 = vmul.f32 1.442695, %v1375_v63  ;;  %v1366_v59 = vsub.f32 %v2631_v29, %v2725_v31  ;;  %v1363_v29 = vsub.f32 %v2625_v25, %v2727_v49 }
 0x3a8   :  { %v1828_v57 = vpop.eup %1827  ;;  %1853 = vpow2.f32 %v1417_v34  ;;  %v1319_v13 = vsub.f32 %v3008_v28, %v2727_v49  ;;  %v1393_v34 = vmul.f32 1.442695, %v1323_v16  ;;  %v1387_v42 = vmul.f32 1.442695, %v1320_v56 }
 0x3a9   :  { %v1830_v53 = vpop.eup %1829  ;;  %1855 = vpow2.f32 %v1415_v18  ;;  %1513 = vmatprep.subr.mxu0 %v1828_v57  ;;  %v3009_v18 = vld [vmem:[#allocation35_spill] sm:$0xff]  ;;  %v1360_v25 = vsub.f32 %v2619_v6, %v2725_v31  ;;  %v3013_v6 = vld [vmem:[#allocation26_spill] sm:$0xff] }
 0x3aa   :  { %v1832_v45 = vpop.eup %1831  ;;  %1857 = vpow2.f32 %v1413_v38  ;;  %1514 = vmatpush1.msra.mxu0 %v1830_v53  ;;  %v1318_v12 = vsub.f32 %v3009_v18, %v2725_v31  ;;  %v1391_v38 = vmul.f32 1.442695, %v1322_v11  ;;  %v1380_v53 = vsub.f32 %v2713_v9, %v2725_v31 }
 0x3ab   :  { %v1834_v61 = vpop.eup %1833  ;;  %1859 = vpow2.f32 %v1411_v40  ;;  %1515 = vmatprep.subr.mxu0 %v1832_v45  ;;  %v3010_v40 = vld [vmem:[#allocation34_spill] sm:$0xff]  ;;  %v1385_v45 = vmul.f32 1.442695, %v1319_v13  ;;  %v1377_v9 = vsub.f32 %v2683_v47, %v2727_v49  ;;  %v1374_v47 = vsub.f32 %v2651_v2, %v2725_v31 }
 0x3ac   :  { %v1836_v36 = vpop.eup %1835  ;;  %1861 = vpow2.f32 %v1409_v33  ;;  %1516 = vmatpush1.msra.mxu0 %v1834_v61  ;;  %v1317_v57 = vsub.f32 %v3010_v40, %v2727_v49  ;;  %v1371_v2 = vsub.f32 %v2641_v46, %v2727_v49  ;;  %v1368_v46 = vsub.f32 %v2635_v26, %v2725_v31 }
 0x3ad   :  { %v1838_v54 = vpop.eup %1837  ;;  %1863 = vpow2.f32 %v1407_v32  ;;  %1517 = vmatprep.subr.mxu0 %v1836_v36  ;;  %v1379_v32 = vsub.f32 %v2703_v8, %v2727_v49  ;;  %v1376_v8 = vsub.f32 %v2673_v27, %v2725_v31  ;;  %v1373_v27 = vsub.f32 %v3000_v17, %v2727_v49 }
 0x3ae   :  { %v1840_v55 = vpop.eup %1839  ;;  %1865 = vpow2.f32 %v1405_v20  ;;  %1518 = vmatpush1.msra.mxu0 %v1838_v54  ;;  %v1383_v20 = vmul.f32 1.442695, %v1318_v12  ;;  %v1381_v7 = vmul.f32 1.442695, %v1317_v57  ;;  %v1501_v3 = vmul.f32 1.442695, %v1377_v9 }
 0x3af   :  { %v1842_v14 = vpop.eup %1841  ;;  %1867 = vpow2.f32 %v1403_v4  ;;  %1519 = vmatprep.subr.mxu0 %v1840_v55  ;;  %v1507_v4 = vmul.f32 1.442695, %v1380_v53  ;;  %v1505_v1 = vmul.f32 1.442695, %v1379_v32  ;;  %v1370_v17 = vsub.f32 %v2639_v24, %v2725_v31 }
 0x3b0   :  { %v1844_v43 = vpop.eup %1843  ;;  %1869 = vpow2.f32 %v1401_v60  ;;  %1520 = vmatpush1.msra.mxu0 %v1842_v14  ;;  %v1503_v60 = vmul.f32 1.442695, %v1378_v62  ;;  %v1493_v21 = vmul.f32 1.442695, %v1373_v27  ;;  %v1367_v24 = vsub.f32 %v2633_v30, %v2727_v49  ;;  %v3016_v27 = vld [vmem:[#allocation29_spill] sm:$0xff] }
 0x3b1   :  { %v1846_v41 = vpop.eup %1845  ;;  %1871 = vpow2.f32 %v1399_v15  ;;  %1521 = vmatprep.subr.mxu0 %v1844_v43  ;;  %v1499_v15 = vmul.f32 1.442695, %v1376_v8  ;;  %v1489_v28 = vmul.f32 1.442695, %v1371_v2  ;;  %v1365_v26 = vsub.f32 %v2629_v50, %v2727_v49  ;;  %v3014_v8 = vld [vmem:[#allocation27_spill] sm:$0xff] }
 0x3b2   :  { %v1848_v58 = vpop.eup %1847  ;;  %1873 = vpow2.f32 %v1397_v39  ;;  %1522 = vmatpush1.msra.mxu0 %v1846_v41  ;;  %v1495_v39 = vmul.f32 1.442695, %v1374_v47  ;;  %v1485_v18 = vmul.f32 1.442695, %v1369_v22  ;;  %v1364_v30 = vsub.f32 %v2627_v5, %v2725_v31  ;;  %v3019_v22 = vld [vmem:[#allocation32_spill] sm:$0xff] }
 0x3b3   :  { %v1850_v33 = vpop.eup %1849  ;;  %1875 = vpow2.f32 %v1395_v48  ;;  %1523 = vmatprep.subr.mxu0 %v1848_v58  ;;  %v1491_v48 = vmul.f32 1.442695, %v1372_v44  ;;  %v1481_v40 = vmul.f32 1.442695, %v1367_v24  ;;  %v1362_v50 = vsub.f32 %v2623_v10, %v2725_v31  ;;  %v3011_v10 = vld [vmem:[#allocation24_spill] sm:$0xff] }
 0x3b4   :  { %v1852_v52 = vpop.eup %1851  ;;  %1877 = vpow2.f32 %v1393_v34  ;;  %1524 = vmatpush1.msra.mxu0 %v1850_v33  ;;  %v1487_v34 = vmul.f32 1.442695, %v1370_v17  ;;  %v1361_v5 = vsub.f32 %v2621_v51, %v2727_v49  ;;  %v1477_v53 = vmul.f32 1.442695, %v1365_v26  ;;  %v3012_v51 = vld [vmem:[#allocation25_spill] sm:$0xff] }
 0x3b5   :  { %v1854_v19 = vpop.eup %1853  ;;  %1879 = vpow2.f32 %v1391_v38  ;;  %1525 = vmatprep.subr.mxu0 %v1852_v52  ;;  %v1483_v38 = vmul.f32 1.442695, %v1368_v46  ;;  %v1475_v52 = vmul.f32 1.442695, %v1364_v30 }
 0x3b6   :  { %v1856_v61 = vpop.eup %1855  ;;  %1881 = vpow2.f32 %v1389_v23  ;;  %1526 = vmatpush1.msra.mxu0 %v1854_v19  ;;  %v1479_v23 = vmul.f32 1.442695, %v1366_v59  ;;  %v1473_v19 = vmul.f32 1.442695, %v1363_v29 }
 0x3b7   :  { %v1858_v35 = vpop.eup %1857  ;;  %1883 = vpow2.f32 %v1387_v42  ;;  %1527 = vmatprep.subr.mxu0 %v1856_v61  ;;  %v1471_v61 = vmul.f32 1.442695, %v1362_v50 }
 0x3b8   :  { %v1860_v36 = vpop.eup %1859  ;;  %1885 = vpow2.f32 %v1385_v45  ;;  %1528 = vmatpush1.msra.mxu0 %v1858_v35  ;;  %v1359_v45 = vsub.f32 %v3011_v10, %v2727_v49  ;;  %v1469_v35 = vmul.f32 1.442695, %v1361_v5 }
 0x3b9   :  { %v1862_v16 = vpop.eup %1861  ;;  %1887 = vpow2.f32 %v1383_v20  ;;  %1529 = vmatprep.subr.mxu0 %v1860_v36  ;;  %v1358_v20 = vsub.f32 %v3012_v51, %v2725_v31  ;;  %v1356_v36 = vsub.f32 %v3014_v8, %v2725_v31 }
 0x3ba   :  { %v1864_v54 = vpop.eup %1863  ;;  %1889 = vpow2.f32 %v1381_v7  ;;  %1530 = vmatpush1.msra.mxu0 %v1862_v16  ;;  %v1357_v7 = vsub.f32 %v3013_v6, %v2727_v49  ;;  %v3015_v16 = vld [vmem:[#allocation28_spill] sm:$0xff] }
 0x3bb   :  { %v1866_v11 = vpop.eup %1865  ;;  %1891 = vpow2.f32 %v1507_v4  ;;  %1531 = vmatprep.subr.mxu0 %v1864_v54  ;;  %v1355_v47 = vsub.f32 %v3015_v16, %v2727_v49 }
 0x3bc   :  { %v1868_v55 = vpop.eup %1867  ;;  %1893 = vpow2.f32 %v1505_v1  ;;  %1532 = vmatpush1.msra.mxu0 %v1866_v11  ;;  %v1467_v1 = vmul.f32 1.442695, %v1360_v25  ;;  %v1463_v11 = vmul.f32 1.442695, %v1358_v20  ;;  %v1461_v2 = vmul.f32 1.442695, %v1357_v7 }
 0x3bd   :  { %v1870_v0 = vpop.eup %1869  ;;  %1895 = vpow2.f32 %v1503_v60  ;;  %1533 = vmatprep.subr.mxu0 %v1868_v55  ;;  %v1465_v60 = vmul.f32 1.442695, %v1359_v45 }
 0x3be   :  { %v1872_v14 = vpop.eup %1871  ;;  %1897 = vpow2.f32 %v1501_v3  ;;  %1534 = vmatpush1.msra.mxu0 %v1870_v0  ;;  %v1354_v3 = vsub.f32 %v3016_v27, %v2725_v31  ;;  %v3018_v0 = vld [vmem:[#allocation31_spill] sm:$0xff]  ;;  %v1960_v27 = vld [vmem:[#allocation3 + $0x8] sm:$0xf0] }
 0x3bf   :  { %v1874_v56 = vpop.eup %1873  ;;  %1899 = vpow2.f32 %v1499_v15  ;;  %1535 = vmatprep.subr.mxu0 %v1872_v14  ;;  %v3017_v15 = vld [vmem:[#allocation30_spill] sm:$0xff]  ;;  %v1352_v17 = vsub.f32 %v3018_v0, %v2725_v31 }
 0x3c0   :  { %v1876_v43 = vpop.eup %1875  ;;  %1901 = vpow2.f32 %v1497_v37  ;;  %1536 = vmatpush1.msra.mxu0 %v1874_v56  ;;  %v1353_v55 = vsub.f32 %v3017_v15, %v2727_v49  ;;  %v1457_v56 = vmul.f32 1.442695, %v1355_v47  ;;  %v1455_v24 = vmul.f32 1.442695, %v1354_v3  ;;  %v1959_v47 = vld [vmem:[#allocation3] sm:$0xf0] }
 0x3c1   :  { %v1878_v13 = vpop.eup %1877  ;;  %1903 = vpow2.f32 %v1495_v39  ;;  %1537 = vmatprep.subr.mxu0 %v1876_v43  ;;  %v1459_v39 = vmul.f32 1.442695, %v1356_v36  ;;  %v1451_v26 = vmul.f32 1.442695, %v1352_v17 }
 0x3c2   :  { %v1880_v41 = vpop.eup %1879  ;;  %1905 = vpow2.f32 %v1493_v21  ;;  %1538 = vmatpush1.msra.mxu0 %v1878_v13  ;;  %v1351_v21 = vsub.f32 %v3019_v22, %v2727_v49  ;;  %v3021_v13 = vld [vmem:[#allocation13_spill] sm:$0xff] }
 0x3c3   :  { %v1882_v12 = vpop.eup %1881  ;;  %1907 = vpow2.f32 %v1491_v48  ;;  %1539 = vmatprep.subr.mxu0 %v1880_v41  ;;  %v3020_v48 = vld [vmem:[#allocation12_spill] sm:$0xff]  ;;  %v1349_v59 = vsub.f32 %v3021_v13, %v2727_v49 }
 0x3c4   :  { %v1884_v58 = vpop.eup %1883  ;;  %1909 = vpow2.f32 %v1489_v28  ;;  %1540 = vmatpush1.msra.mxu0 %v1882_v12  ;;  %v1350_v43 = vsub.f32 %v3020_v48, %v2725_v31  ;;  %v1449_v12 = vmul.f32 1.442695, %v1351_v21 }
 0x3c5   :  { %v1886_v57 = vpop.eup %1885  ;;  %1911 = vpow2.f32 %v1487_v34  ;;  %1541 = vmatprep.subr.mxu0 %v1884_v58  ;;  %v1453_v34 = vmul.f32 1.442695, %v1353_v55  ;;  %v1445_v58 = vmul.f32 1.442695, %v1349_v59 }
 0x3c6   :  { %v1888_v33 = vpop.eup %1887  ;;  %1913 = vpow2.f32 %v1485_v18  ;;  %1542 = vmatpush1.msra.mxu0 %v1886_v57  ;;  %v1447_v31 = vmul.f32 1.442695, %v1350_v43 }
 0x3c7   :  { %v1890_v42 = vpop.eup %1889  ;;  %1915 = vpow2.f32 %v1483_v38  ;;  %1543 = vmatprep.subr.mxu0 %v1888_v33 }
 0x3c8   :  { %v1892_v32 = vpop.eup %1891  ;;  %1917 = vpow2.f32 %v1481_v40  ;;  %1544 = vmatpush1.msra.mxu0 %v1890_v42 }
 0x3c9   :  { %v1894_v62 = vpop.eup %1893  ;;  %1919 = vpow2.f32 %v1479_v23  ;;  %1545 = vmatprep.subr.mxu0 %v1892_v32 }
 0x3ca   :  { %v1896_v9 = vpop.eup %1895  ;;  %1921 = vpow2.f32 %v1477_v53  ;;  %1546 = vmatpush2.msra.mxu0 %v1894_v62  ;;  %v1511_v62 = vld [vmem:[#allocation2] sm:$0x1f] }
 0x3cb   :  { %v1898_v4 = vpop.eup %1897  ;;  %1923 = vpow2.f32 %v1475_v52  ;;  %1547 = vmatprep.subr.mxu0 %v1896_v9 }
 0x3cc   :  { %v1900_v63 = vpop.eup %1899  ;;  %1925 = vpow2.f32 %v1473_v19  ;;  %1548 = vmatpush2.msra.mxu0 %v1898_v4 }
 0x3cd   :  { %v1902_v54 = vpop.eup %1901  ;;  %1927 = vpow2.f32 %v1471_v61  ;;  %1549 = vmatprep.subr.mxu0 %v1900_v63 }
 0x3ce   :  { %v1904_v44 = vpop.eup %1903  ;;  %1929 = vpow2.f32 %v1469_v35  ;;  %1550 = vmatpush2.msra.mxu0 %v1902_v54  ;;  %v3022_v35 = vld [vmem:[#allocation19_spill] sm:$0xff] }
 0x3cf   :  { %v1906_v37 = vpop.eup %1905  ;;  %1931 = vpow2.f32 %v1467_v1  ;;  %1551 = vmatprep.subr.mxu0 %v1904_v44 }
 0x3d0   :  { %v1908_v14 = vpop.eup %1907  ;;  %1933 = vpow2.f32 %v1465_v60  ;;  %1552 = vmatpush2.msra.mxu0 %v1906_v37 }
 0x3d1   :  { %v1910_v46 = vpop.eup %1909  ;;  %1935 = vpow2.f32 %v1463_v11  ;;  %1553 = vmatprep.subr.mxu0 %v1908_v14 }
 0x3d2   :  { %v1912_v28 = vpop.eup %1911  ;;  %1937 = vpow2.f32 %v1461_v2  ;;  %1554 = vmatpush2.msra.mxu0 %v1910_v46 }
 0x3d3   :  { %v1914_v41 = vpop.eup %1913  ;;  %1939 = vpow2.f32 %v1459_v39  ;;  %1555 = vmatprep.subr.mxu0 %v1912_v28 }
 0x3d4   :  { %v1916_v18 = vpop.eup %1915  ;;  %1941 = vpow2.f32 %v1457_v56  ;;  %1556 = vmatpush2.msra.mxu0 %v1914_v41 }
 0x3d5   :  { %v1918_v30 = vpop.eup %1917  ;;  %1943 = vpow2.f32 %v1455_v24  ;;  %1557 = vmatprep.subr.mxu0 %v1916_v18 }
 0x3d6   :  { %v1920_v38 = vpop.eup %1919  ;;  %1945 = vpow2.f32 %v1453_v34  ;;  %1558 = vmatpush2.msra.mxu0 %v1918_v30 }
 0x3d7   :  { %v1922_v49 = vpop.eup %1921  ;;  %1947 = vpow2.f32 %v1451_v26  ;;  %1559 = vmatprep.subr.mxu0 %v1920_v38 }
 0x3d8   :  { %v1924_v29 = vpop.eup %1923  ;;  %1949 = vpow2.f32 %v1449_v12  ;;  %1560 = vmatpush2.msra.mxu0 %v1922_v49 }
 0x3d9   :  { %v1926_v40 = vpop.eup %1925  ;;  %1951 = vpow2.f32 %v1447_v31  ;;  %1561 = vmatprep.subr.mxu0 %v1924_v29 }
 0x3da   :  { %v1928_v57 = vpop.eup %1927  ;;  %1953 = vpow2.f32 %v1445_v58  ;;  %1562 = vmatpush2.msra.mxu0 %v1926_v40 }
 0x3db   :  { %v1930_v50 = vpop.eup %1929  ;;  %1563 = vmatprep.subr.mxu0 %v1928_v57 }
 0x3dc   :  { %v1932_v23 = vpop.eup %1931  ;;  %1564 = vmatpush2.msra.mxu0 %v1930_v50 }
 0x3dd   :  { %v1934_v33 = vpop.eup %1933  ;;  %1565 = vmatprep.subr.mxu0 %v1932_v23 }
 0x3de   :  { %v1936_v5 = vpop.eup %1935  ;;  %1566 = vmatpush2.msra.mxu0 %v1934_v33 }
 0x3df   :  { %v1938_v53 = vpop.eup %1937  ;;  %1567 = vmatprep.subr.mxu0 %v1936_v5 }
 0x3e0   :  { %v1940_v42 = vpop.eup %1939  ;;  %1568 = vmatpush2.msra.mxu0 %v1938_v53 }
 0x3e1   :  { %v1942_v25 = vpop.eup %1941  ;;  %1569 = vmatprep.subr.mxu0 %v1940_v42 }
 0x3e2   :  { %v1944_v52 = vpop.eup %1943  ;;  %1570 = vmatpush2.msra.mxu0 %v1942_v25 }
 0x3e3   :  { %v1946_v32 = vpop.eup %1945  ;;  %1571 = vmatprep.subr.mxu0 %v1944_v52 }
 0x3e4   :  { %v1948_v10 = vpop.eup %1947  ;;  %1572 = vmatpush2.msra.mxu0 %v1946_v32 }
 0x3e5   :  { %v1950_v45 = vpop.eup %1949  ;;  %1573 = vmatprep.subr.mxu0 %v1948_v10 }
 0x3e6   :  { %v1952_v19 = vpop.eup %1951  ;;  %1574 = vmatpush2.msra.mxu0 %v1950_v45 }
 0x3e7   :  { %v1954_v51 = vpop.eup %1953  ;;  %1575 = vmatprep.subr.mxu0 %v1952_v19 }
 0x3e8   :  { %1576 = vmatpush2.msra.mxu0 %v1954_v51 }
 0x3e9   :  { %1578 = vmatmul.mubr.f32.vlgmr.msra.gmra.mxu0 %v1511_v62 }
 0x4a9   :  { %v1579_v20 = vpop.f32.mrf.mxu0 }
 0x4aa   :  { %1955 = vrcp.f32 %v1579_v20 }
 0x4ab   :  { %v1581_v61 = vpop.f32.mrf.mxu0 }
 0x4ac   :  { %1957 = vrcp.f32 %v1581_v61 }
 0x4b7   :  { %v1956_v9 = vpop.eup %1955 }
 0x4b8   :  { %v1586_v6 = vmul.f32 0.002, %v1956_v9 }
 0x4b9   :  { %v1958_v7 = vpop.eup %1957 }
 0x4ba   :  { %v1591_v4 = vrot.slane %v1586_v6, %v3022_v35  ;;  %v1587_v8 = vmul.f32 0.002, %v1958_v7 }
 0x4bc   :  { %v1596_v36 = vmul.f32 %v1591_v4, %v1579_v20  ;;  %v1595_v1 = vrot.slane %v1587_v8, %v3022_v35 }
 0x4be   :  { %v1600_v63 = vrot.slane %v1596_v36, 4  ;;  %v1597_v16 = vmul.f32 %v1595_v1, %v1581_v61 }
 0x4c0   :  { %v1604_v60 = vadd.f32 %v1959_v47, %v1600_v63  ;;  %v1601_v54 = vrot.slane %v1597_v16, 4 }
 0x4c2   :  { %1606 = vst [vmem:[#allocation6] sm:$0xf0] %v1604_v60  ;;  %v1605_v3 = vadd.f32 %v1960_v27, %v1601_v54 }
 0x4c4   :  { %1607 = vst [vmem:[#allocation6 + $0x8] sm:$0xf0] %v1605_v3 }
 0x4c5   :  { %1992 = shalt.err (!%p1989_p9)
}
 0x4c6   :  { %1617 = dma.vmem_to_hbm [thread:$0]  %s1615_s11, 256, %s2863_s1, [#allocation5]  }
 0x4c7   :  { %2003 = dma.done.wait [#allocation5], 256  }
 0x4c8   :  { %2004 = vsyncadd [#allocation5], 4294967040 }
 0x4c9   :  { %1621 = vsyncpa [#allocation4], 1 }
 0x4ca   :  { %1622 = vsyncpa [#allocation5], 1 }

</bundles_post_ra>
